<compile_context>
chip_gen: v7x
topology: tpu7x:2x2x1
jax: 0.10.0
libtpu: 0.0.40
codegen_flags: <defaults>
</compile_context>

<pallas_src>
import functools

import jax
import jax.numpy as jnp
from jax.experimental import pallas as pl
from jax.experimental.pallas import tpu as pltpu


def _lstm_model2_kernel(num_layers, hidden_size, input_size, batch, seq_len,
                        output_size, *refs):
    """Whole forward pass in one kernel (all operands VMEM-resident).

    refs layout:
      x_ref      (T*B, I)          bf16
      w0_ref     (I+H, 4H)         bf16   [W_ih0.T ; W_hh0.T], g-cols pre-scaled x2
      w_rest_ref (L-1, 2H, 4H)     bf16   per layer l>=1: [W_ih_l.T ; W_hh_l.T]
                                          (only present if num_layers > 1)
      bias_ref   (L+1, 4H)         f32    rows 0..L-1: b_ih+b_hh (g-cols x2),
                                          row L: fc bias zero-padded to 4H
      fc_w_ref   (H, O)            bf16
      out_ref    (B, O)            f32
    """
    H = hidden_size
    I = input_size
    B = batch
    T = seq_len
    O = output_size

    x_ref = refs[0]
    w0_ref = refs[1]
    idx = 2
    if num_layers > 1:
        w_rest_ref = refs[idx]
        idx += 1
    bias_ref = refs[idx]
    fc_w_ref = refs[idx + 1]
    out_ref = refs[idx + 2]

    # --- hoist all weight/bias loads out of the recurrence (tiny, stay in vregs)
    w_ih0 = w0_ref[0:I, :]            # (I, 4H) bf16
    w_hh0 = w0_ref[I:I + H, :]        # (H, 4H) bf16
    biases = bias_ref[...]            # (L+1, 4H) f32
    b0 = biases[0:1, :]               # (1, 4H)

    w_ih_rest, w_hh_rest, b_rest = [], [], []
    for l in range(1, num_layers):
        w_ih_rest.append(w_rest_ref[l - 1, 0:H, :])       # (H, 4H) bf16
        w_hh_rest.append(w_rest_ref[l - 1, H:2 * H, :])   # (H, 4H) bf16
        b_rest.append(biases[l:l + 1, :])                 # (1, 4H) f32

    def gates(z, c_prev):
        # PyTorch gate order: i, f, g, o.  One full-width sigmoid over (B,4H);
        # the g-gate columns of z already hold 2*x_g (weights/bias pre-scaled),
        # so g = tanh(x_g) = 2*sigmoid(2*x_g) - 1 is a cheap VPU fixup.
        sig = jax.nn.sigmoid(z)                 # single (B,4H) EUP pass
        i = sig[:, 0 * H:1 * H]
        f = sig[:, 1 * H:2 * H]
        g = 2.0 * sig[:, 2 * H:3 * H] - 1.0
        o = sig[:, 3 * H:4 * H]
        c_new = f * c_prev + i * g              # f32 VPU math (v5e-safe)
        h_new = o * jnp.tanh(c_new)             # small (B,H) EUP pass
        return h_new, c_new

    # Layer-0 input projection does not depend on h -> one tall matmul,
    # bias pre-added.  (T*B, I) x (I, 4H) -> (T*B, 4H) f32.
    zx0 = jnp.dot(x_ref[...], w_ih0, preferred_element_type=jnp.float32) + b0

    hs = [jnp.zeros((B, H), jnp.float32) for _ in range(num_layers)]
    cs = [jnp.zeros((B, H), jnp.float32) for _ in range(num_layers)]

    # Fully unrolled time loop (T static & small): LLO sees the whole serial
    # h->h chain; weights and zx0 stay in vregs.
    for t in range(T):
        # Layer 0: only the h-recurrent matmul remains in-loop.
        z0 = zx0[t * B:(t + 1) * B, :] + jnp.dot(
            hs[0].astype(jnp.bfloat16), w_hh0, preferred_element_type=jnp.float32)
        hs[0], cs[0] = gates(z0, cs[0])
        inp = hs[0]
        # Layers >= 1: two back-to-back small dots summed into z (no concat).
        # (inter-layer LSTM dropout is identity in eval mode)
        for l in range(1, num_layers):
            z = (jnp.dot(inp.astype(jnp.bfloat16), w_ih_rest[l - 1],
                         preferred_element_type=jnp.float32)
                 + jnp.dot(hs[l].astype(jnp.bfloat16), w_hh_rest[l - 1],
                           preferred_element_type=jnp.float32)
                 + b_rest[l - 1])
            hs[l], cs[l] = gates(z, cs[l])
            inp = hs[l]

    # out[:, -1, :] of top layer -> dropout (identity in eval) -> Linear.
    # TODO(synk): nn.Dropout(p=0.3) is stochastic only in training mode;
    # eval-mode semantics (identity) are implemented here.
    fc_b = biases[num_layers:num_layers + 1, 0:O]                      # (1, O)
    out = jnp.dot(hs[-1].astype(jnp.bfloat16), fc_w_ref[...],
                  preferred_element_type=jnp.float32) + fc_b
    # O=24 < 128 lanes -> one masked store; negligible at this size.
    out_ref[...] = out.astype(out_ref.dtype)


def init_params(key, input_size, hidden_size, num_layers, output_size):
    """Deterministic init mimicking PyTorch U(-1/sqrt(H), 1/sqrt(H))."""
    params = {}
    k = 1.0 / jnp.sqrt(jnp.float32(hidden_size))
    keys = jax.random.split(key, 4 * num_layers + 2)
    idx = 0
    for l in range(num_layers):
        in_l = input_size if l == 0 else hidden_size
        params[f"w_ih_{l}"] = jax.random.uniform(
            keys[idx], (4 * hidden_size, in_l), jnp.float32, -k, k); idx += 1
        params[f"w_hh_{l}"] = jax.random.uniform(
            keys[idx], (4 * hidden_size, hidden_size), jnp.float32, -k, k); idx += 1
        params[f"b_ih_{l}"] = jax.random.uniform(
            keys[idx], (4 * hidden_size,), jnp.float32, -k, k); idx += 1
        params[f"b_hh_{l}"] = jax.random.uniform(
            keys[idx], (4 * hidden_size,), jnp.float32, -k, k); idx += 1
    params["fc_w"] = jax.random.uniform(
        keys[idx], (output_size, hidden_size), jnp.float32, -k, k); idx += 1
    params["fc_b"] = jax.random.uniform(
        keys[idx], (output_size,), jnp.float32, -k, k)
    return params


def lstm_model2_forward(x, params, *, hidden_size, num_layers, output_size):
    B, T, I = x.shape
    H = hidden_size
    G = 4 * H
    assert num_layers >= 1
    assert output_size <= G, "fc bias is packed into the (L+1, 4H) bias slab"

    # g-gate (columns 2H:3H) scale of 2 -> in-kernel tanh via one sigmoid.
    g_scale = jnp.concatenate([
        jnp.ones((2 * H,), jnp.float32),
        jnp.full((H,), 2.0, jnp.float32),
        jnp.ones((H,), jnp.float32),
    ])[None, :]                                                        # (1, 4H)

    # (B, T, I) -> (T, B, I) -> (T*B, I); MXU operands pre-cast to bf16
    # (f32 accumulation inside the kernel keeps numerics close to f32 ref).
    x_2d = jnp.transpose(x, (1, 0, 2)).reshape(T * B, I).astype(jnp.bfloat16)

    # Layer-0 weight slab: [W_ih0.T ; W_hh0.T] -> (I+H, 4H), g-cols pre-scaled.
    w0 = jnp.concatenate(
        [params["w_ih_0"].T, params["w_hh_0"].T], axis=0) * g_scale
    w0 = w0.astype(jnp.bfloat16)

    # Layers >= 1 weight slab: (L-1, 2H, 4H), each [W_ih_l.T ; W_hh_l.T].
    w_rest = None
    if num_layers > 1:
        w_rest = jnp.stack([
            jnp.concatenate(
                [params[f"w_ih_{l}"].T, params[f"w_hh_{l}"].T], axis=0) * g_scale
            for l in range(1, num_layers)
        ]).astype(jnp.bfloat16)

    # Bias slab: rows 0..L-1 = (b_ih + b_hh) with g-cols x2; row L = fc bias
    # zero-padded to 4H.  Single f32 input instead of L+1 tiny ones.
    bias_rows = [
        ((params[f"b_ih_{l}"] + params[f"b_hh_{l}"])[None, :] * g_scale)[0]
        for l in range(num_layers)
    ]
    fc_b_padded = jnp.zeros((G,), jnp.float32).at[:output_size].set(params["fc_b"])
    bias_slab = jnp.stack(bias_rows + [fc_b_padded])                   # (L+1, 4H)

    fc_w = params["fc_w"].T.astype(jnp.bfloat16)                       # (H, O)

    flat_inputs = [x_2d, w0]
    if w_rest is not None:
        flat_inputs.append(w_rest)
    flat_inputs += [bias_slab, fc_w]
    n_in = len(flat_inputs)

    kernel = functools.partial(
        _lstm_model2_kernel, num_layers, H, I, B, T, output_size)
    # NOTE: at these shapes everything fits easily in VMEM on v5e/v6e/v7x.
    # Scaling levers (in order): (1) batch grid axis with
    # dimension_semantics=("parallel",) to use v7x's 2nd TensorCore; (2) if
    # T*B*I grows, chunk x along T (Buffered BlockSpec) sized against v7x's
    # 64 MiB VMEM / 32 MiB scoped default, raising vmem_limit_bytes if needed.
    # Enlarging the per-step matmul tiles does NOT help: the recurrent dots
    # are latency-bound at M=B, not MXU-throughput-bound.
    return pl.pallas_call(
        kernel,
        out_shape=jax.ShapeDtypeStruct((B, output_size), jnp.float32),
        in_specs=[pl.BlockSpec(memory_space=pltpu.MemorySpace.VMEM)] * n_in,
        out_specs=pl.BlockSpec(memory_space=pltpu.MemorySpace.VMEM),
    )(*flat_inputs)


if __name__ == "__main__":
    # Small shapes consistent with the module's forward.
    input_size, hidden_size, num_layers, output_size = 16, 32, 2, 24
    B, T = 2, 8

    key = jax.random.PRNGKey(0)
    k_x, k_p = jax.random.split(key)
    x = jax.random.normal(k_x, (B, T, input_size), jnp.float32)  # (B, T, I)
    params = init_params(k_p, input_size, hidden_size, num_layers, output_size)

    fwd = jax.jit(functools.partial(
        lstm_model2_forward,
        hidden_size=hidden_size,
        num_layers=num_layers,
        output_size=output_size,
    ))
    out = fwd(x, params)
    jax.block_until_ready(out)
    assert out.shape == (B, output_size)
    print("KERNEL_OK")
</pallas_src>

<mosaic_0001>
module attributes {stable_mosaic.version = 11 : i64} {
  func.func @_lstm_model2_kernel(%arg0: memref<16x16xbf16, #tpu.memory_space<vmem>>, %arg1: memref<48x128xbf16, #tpu.memory_space<vmem>>, %arg2: memref<1x64x128xbf16, #tpu.memory_space<vmem>>, %arg3: memref<3x128xf32, #tpu.memory_space<vmem>>, %arg4: memref<32x24xbf16, #tpu.memory_space<vmem>>, %arg5: memref<2x24xf32, #tpu.memory_space<vmem>>) attributes {dimension_semantics = [], scalar_prefetch = 0 : i64, scratch_operands = 0 : i64, tpu.core_type = #tpu.core_type<tc>} {
    %c0 = arith.constant 0 : index
    %c0_0 = arith.constant 0 : index
    %0 = vector.load %arg1[%c0, %c0_0] : memref<48x128xbf16, #tpu.memory_space<vmem>>, vector<16x128xbf16>
    %c16 = arith.constant 16 : index
    %c0_1 = arith.constant 0 : index
    %1 = vector.load %arg1[%c16, %c0_1] : memref<48x128xbf16, #tpu.memory_space<vmem>>, vector<32x128xbf16>
    %c0_2 = arith.constant 0 : index
    %c0_3 = arith.constant 0 : index
    %2 = vector.load %arg3[%c0_2, %c0_3] : memref<3x128xf32, #tpu.memory_space<vmem>>, vector<3x128xf32>
    %3 = vector.extract_strided_slice %2 {offsets = [0, 0], sizes = [1, 128], strides = [1, 1]} : vector<3x128xf32> to vector<1x128xf32>
    %c0_4 = arith.constant 0 : index
    %c0_5 = arith.constant 0 : index
    %c0_6 = arith.constant 0 : index
    %4 = vector.load %arg2[%c0_4, %c0_5, %c0_6] : memref<1x64x128xbf16, #tpu.memory_space<vmem>>, vector<1x32x128xbf16>
    %5 = vector.shape_cast %4 : vector<1x32x128xbf16> to vector<32x128xbf16>
    %c0_7 = arith.constant 0 : index
    %c32 = arith.constant 32 : index
    %c0_8 = arith.constant 0 : index
    %6 = vector.load %arg2[%c0_7, %c32, %c0_8] : memref<1x64x128xbf16, #tpu.memory_space<vmem>>, vector<1x32x128xbf16>
    %7 = vector.shape_cast %6 : vector<1x32x128xbf16> to vector<32x128xbf16>
    %8 = vector.extract_strided_slice %2 {offsets = [1, 0], sizes = [1, 128], strides = [1, 1]} : vector<3x128xf32> to vector<1x128xf32>
    %c0_9 = arith.constant 0 : index
    %c0_10 = arith.constant 0 : index
    %9 = vector.load %arg0[%c0_9, %c0_10] : memref<16x16xbf16, #tpu.memory_space<vmem>>, vector<16x16xbf16>
    %cst = arith.constant dense<0.000000e+00> : vector<16x128xf32>
    %10 = tpu.matmul %9, %0, %cst {dimension_numbers = #tpu.dot_dimension_numbers<[1], [0], [0], [1], [0, 0, 1, 1], [], []>} : vector<16x16xbf16>, vector<16x128xbf16>, vector<16x128xf32> -> vector<16x128xf32>
    %11 = vector.broadcast %3 : vector<1x128xf32> to vector<16x128xf32>
    %12 = arith.addf %10, %11 : vector<16x128xf32>
    %cst_11 = arith.constant 0.000000e+00 : f32
    %13 = vector.broadcast %cst_11 : f32 to vector<2x32xf32>
    %cst_12 = arith.constant 0.000000e+00 : f32
    %14 = vector.broadcast %cst_12 : f32 to vector<2x32xf32>
    %cst_13 = arith.constant 0.000000e+00 : f32
    %15 = vector.broadcast %cst_13 : f32 to vector<2x32xf32>
    %cst_14 = arith.constant 0.000000e+00 : f32
    %16 = vector.broadcast %cst_14 : f32 to vector<2x32xf32>
    %17 = vector.extract_strided_slice %12 {offsets = [0, 0], sizes = [2, 128], strides = [1, 1]} : vector<16x128xf32> to vector<2x128xf32>
    %18 = arith.truncf %13 : vector<2x32xf32> to vector<2x32xbf16>
    %cst_15 = arith.constant dense<0.000000e+00> : vector<2x128xf32>
    %19 = tpu.matmul %18, %1, %cst_15 {dimension_numbers = #tpu.dot_dimension_numbers<[1], [0], [0], [1], [0, 0, 1, 1], [], []>} : vector<2x32xbf16>, vector<32x128xbf16>, vector<2x128xf32> -> vector<2x128xf32>
    %20 = arith.addf %17, %19 : vector<2x128xf32>
    %21 = arith.negf %20 : vector<2x128xf32>
    %22 = math.exp %21 : vector<2x128xf32>
    %cst_16 = arith.constant 1.000000e+00 : f32
    %23 = vector.broadcast %cst_16 : f32 to vector<2x128xf32>
    %24 = arith.addf %23, %22 : vector<2x128xf32>
    %25 = arith.divf %23, %24 : vector<2x128xf32>
    %26 = vector.extract_strided_slice %25 {offsets = [0, 0], sizes = [2, 32], strides = [1, 1]} : vector<2x128xf32> to vector<2x32xf32>
    %27 = vector.extract_strided_slice %25 {offsets = [0, 32], sizes = [2, 32], strides = [1, 1]} : vector<2x128xf32> to vector<2x32xf32>
    %28 = vector.extract_strided_slice %25 {offsets = [0, 64], sizes = [2, 32], strides = [1, 1]} : vector<2x128xf32> to vector<2x32xf32>
    %cst_17 = arith.constant 2.000000e+00 : f32
    %29 = vector.broadcast %cst_17 : f32 to vector<2x32xf32>
    %30 = arith.mulf %29, %28 : vector<2x32xf32>
    %cst_18 = arith.constant 1.000000e+00 : f32
    %31 = vector.broadcast %cst_18 : f32 to vector<2x32xf32>
    %32 = arith.subf %30, %31 : vector<2x32xf32>
    %33 = vector.extract_strided_slice %25 {offsets = [0, 96], sizes = [2, 32], strides = [1, 1]} : vector<2x128xf32> to vector<2x32xf32>
    %34 = arith.mulf %27, %15 : vector<2x32xf32>
    %35 = arith.mulf %26, %32 : vector<2x32xf32>
    %36 = arith.addf %34, %35 : vector<2x32xf32>
    %37 = math.tanh %36 : vector<2x32xf32>
    %38 = arith.mulf %33, %37 : vector<2x32xf32>
    %39 = arith.truncf %38 : vector<2x32xf32> to vector<2x32xbf16>
    %cst_19 = arith.constant dense<0.000000e+00> : vector<2x128xf32>
    %40 = tpu.matmul %39, %5, %cst_19 {dimension_numbers = #tpu.dot_dimension_numbers<[1], [0], [0], [1], [0, 0, 1, 1], [], []>} : vector<2x32xbf16>, vector<32x128xbf16>, vector<2x128xf32> -> vector<2x128xf32>
    %41 = arith.truncf %14 : vector<2x32xf32> to vector<2x32xbf16>
    %cst_20 = arith.constant dense<0.000000e+00> : vector<2x128xf32>
    %42 = tpu.matmul %41, %7, %cst_20 {dimension_numbers = #tpu.dot_dimension_numbers<[1], [0], [0], [1], [0, 0, 1, 1], [], []>} : vector<2x32xbf16>, vector<32x128xbf16>, vector<2x128xf32> -> vector<2x128xf32>
    %43 = arith.addf %40, %42 : vector<2x128xf32>
    %44 = vector.broadcast %8 : vector<1x128xf32> to vector<2x128xf32>
    %45 = arith.addf %43, %44 : vector<2x128xf32>
    %46 = arith.negf %45 : vector<2x128xf32>
    %47 = math.exp %46 : vector<2x128xf32>
    %cst_21 = arith.constant 1.000000e+00 : f32
    %48 = vector.broadcast %cst_21 : f32 to vector<2x128xf32>
    %49 = arith.addf %48, %47 : vector<2x128xf32>
    %50 = arith.divf %48, %49 : vector<2x128xf32>
    %51 = vector.extract_strided_slice %50 {offsets = [0, 0], sizes = [2, 32], strides = [1, 1]} : vector<2x128xf32> to vector<2x32xf32>
    %52 = vector.extract_strided_slice %50 {offsets = [0, 32], sizes = [2, 32], strides = [1, 1]} : vector<2x128xf32> to vector<2x32xf32>
    %53 = vector.extract_strided_slice %50 {offsets = [0, 64], sizes = [2, 32], strides = [1, 1]} : vector<2x128xf32> to vector<2x32xf32>
    %cst_22 = arith.constant 2.000000e+00 : f32
    %54 = vector.broadcast %cst_22 : f32 to vector<2x32xf32>
    %55 = arith.mulf %54, %53 : vector<2x32xf32>
    %cst_23 = arith.constant 1.000000e+00 : f32
    %56 = vector.broadcast %cst_23 : f32 to vector<2x32xf32>
    %57 = arith.subf %55, %56 : vector<2x32xf32>
    %58 = vector.extract_strided_slice %50 {offsets = [0, 96], sizes = [2, 32], strides = [1, 1]} : vector<2x128xf32> to vector<2x32xf32>
    %59 = arith.mulf %52, %16 : vector<2x32xf32>
    %60 = arith.mulf %51, %57 : vector<2x32xf32>
    %61 = arith.addf %59, %60 : vector<2x32xf32>
    %62 = math.tanh %61 : vector<2x32xf32>
    %63 = arith.mulf %58, %62 : vector<2x32xf32>
    %64 = vector.extract_strided_slice %12 {offsets = [2, 0], sizes = [2, 128], strides = [1, 1]} : vector<16x128xf32> to vector<2x128xf32>
    %65 = arith.truncf %38 : vector<2x32xf32> to vector<2x32xbf16>
    %cst_24 = arith.constant dense<0.000000e+00> : vector<2x128xf32>
    %66 = tpu.matmul %65, %1, %cst_24 {dimension_numbers = #tpu.dot_dimension_numbers<[1], [0], [0], [1], [0, 0, 1, 1], [], []>} : vector<2x32xbf16>, vector<32x128xbf16>, vector<2x128xf32> -> vector<2x128xf32>
    %67 = arith.addf %64, %66 : vector<2x128xf32>
    %68 = arith.negf %67 : vector<2x128xf32>
    %69 = math.exp %68 : vector<2x128xf32>
    %cst_25 = arith.constant 1.000000e+00 : f32
    %70 = vector.broadcast %cst_25 : f32 to vector<2x128xf32>
    %71 = arith.addf %70, %69 : vector<2x128xf32>
    %72 = arith.divf %70, %71 : vector<2x128xf32>
    %73 = vector.extract_strided_slice %72 {offsets = [0, 0], sizes = [2, 32], strides = [1, 1]} : vector<2x128xf32> to vector<2x32xf32>
    %74 = vector.extract_strided_slice %72 {offsets = [0, 32], sizes = [2, 32], strides = [1, 1]} : vector<2x128xf32> to vector<2x32xf32>
    %75 = vector.extract_strided_slice %72 {offsets = [0, 64], sizes = [2, 32], strides = [1, 1]} : vector<2x128xf32> to vector<2x32xf32>
    %cst_26 = arith.constant 2.000000e+00 : f32
    %76 = vector.broadcast %cst_26 : f32 to vector<2x32xf32>
    %77 = arith.mulf %76, %75 : vector<2x32xf32>
    %cst_27 = arith.constant 1.000000e+00 : f32
    %78 = vector.broadcast %cst_27 : f32 to vector<2x32xf32>
    %79 = arith.subf %77, %78 : vector<2x32xf32>
    %80 = vector.extract_strided_slice %72 {offsets = [0, 96], sizes = [2, 32], strides = [1, 1]} : vector<2x128xf32> to vector<2x32xf32>
    %81 = arith.mulf %74, %36 : vector<2x32xf32>
    %82 = arith.mulf %73, %79 : vector<2x32xf32>
    %83 = arith.addf %81, %82 : vector<2x32xf32>
    %84 = math.tanh %83 : vector<2x32xf32>
    %85 = arith.mulf %80, %84 : vector<2x32xf32>
    %86 = arith.truncf %85 : vector<2x32xf32> to vector<2x32xbf16>
    %cst_28 = arith.constant dense<0.000000e+00> : vector<2x128xf32>
    %87 = tpu.matmul %86, %5, %cst_28 {dimension_numbers = #tpu.dot_dimension_numbers<[1], [0], [0], [1], [0, 0, 1, 1], [], []>} : vector<2x32xbf16>, vector<32x128xbf16>, vector<2x128xf32> -> vector<2x128xf32>
    %88 = arith.truncf %63 : vector<2x32xf32> to vector<2x32xbf16>
    %cst_29 = arith.constant dense<0.000000e+00> : vector<2x128xf32>
    %89 = tpu.matmul %88, %7, %cst_29 {dimension_numbers = #tpu.dot_dimension_numbers<[1], [0], [0], [1], [0, 0, 1, 1], [], []>} : vector<2x32xbf16>, vector<32x128xbf16>, vector<2x128xf32> -> vector<2x128xf32>
    %90 = arith.addf %87, %89 : vector<2x128xf32>
    %91 = vector.broadcast %8 : vector<1x128xf32> to vector<2x128xf32>
    %92 = arith.addf %90, %91 : vector<2x128xf32>
    %93 = arith.negf %92 : vector<2x128xf32>
    %94 = math.exp %93 : vector<2x128xf32>
    %cst_30 = arith.constant 1.000000e+00 : f32
    %95 = vector.broadcast %cst_30 : f32 to vector<2x128xf32>
    %96 = arith.addf %95, %94 : vector<2x128xf32>
    %97 = arith.divf %95, %96 : vector<2x128xf32>
    %98 = vector.extract_strided_slice %97 {offsets = [0, 0], sizes = [2, 32], strides = [1, 1]} : vector<2x128xf32> to vector<2x32xf32>
    %99 = vector.extract_strided_slice %97 {offsets = [0, 32], sizes = [2, 32], strides = [1, 1]} : vector<2x128xf32> to vector<2x32xf32>
    %100 = vector.extract_strided_slice %97 {offsets = [0, 64], sizes = [2, 32], strides = [1, 1]} : vector<2x128xf32> to vector<2x32xf32>
    %cst_31 = arith.constant 2.000000e+00 : f32
    %101 = vector.broadcast %cst_31 : f32 to vector<2x32xf32>
    %102 = arith.mulf %101, %100 : vector<2x32xf32>
    %cst_32 = arith.constant 1.000000e+00 : f32
    %103 = vector.broadcast %cst_32 : f32 to vector<2x32xf32>
    %104 = arith.subf %102, %103 : vector<2x32xf32>
    %105 = vector.extract_strided_slice %97 {offsets = [0, 96], sizes = [2, 32], strides = [1, 1]} : vector<2x128xf32> to vector<2x32xf32>
    %106 = arith.mulf %99, %61 : vector<2x32xf32>
    %107 = arith.mulf %98, %104 : vector<2x32xf32>
    %108 = arith.addf %106, %107 : vector<2x32xf32>
    %109 = math.tanh %108 : vector<2x32xf32>
    %110 = arith.mulf %105, %109 : vector<2x32xf32>
    %111 = vector.extract_strided_slice %12 {offsets = [4, 0], sizes = [2, 128], strides = [1, 1]} : vector<16x128xf32> to vector<2x128xf32>
    %112 = arith.truncf %85 : vector<2x32xf32> to vector<2x32xbf16>
    %cst_33 = arith.constant dense<0.000000e+00> : vector<2x128xf32>
    %113 = tpu.matmul %112, %1, %cst_33 {dimension_numbers = #tpu.dot_dimension_numbers<[1], [0], [0], [1], [0, 0, 1, 1], [], []>} : vector<2x32xbf16>, vector<32x128xbf16>, vector<2x128xf32> -> vector<2x128xf32>
    %114 = arith.addf %111, %113 : vector<2x128xf32>
    %115 = arith.negf %114 : vector<2x128xf32>
    %116 = math.exp %115 : vector<2x128xf32>
    %cst_34 = arith.constant 1.000000e+00 : f32
    %117 = vector.broadcast %cst_34 : f32 to vector<2x128xf32>
    %118 = arith.addf %117, %116 : vector<2x128xf32>
    %119 = arith.divf %117, %118 : vector<2x128xf32>
    %120 = vector.extract_strided_slice %119 {offsets = [0, 0], sizes = [2, 32], strides = [1, 1]} : vector<2x128xf32> to vector<2x32xf32>
    %121 = vector.extract_strided_slice %119 {offsets = [0, 32], sizes = [2, 32], strides = [1, 1]} : vector<2x128xf32> to vector<2x32xf32>
    %122 = vector.extract_strided_slice %119 {offsets = [0, 64], sizes = [2, 32], strides = [1, 1]} : vector<2x128xf32> to vector<2x32xf32>
    %cst_35 = arith.constant 2.000000e+00 : f32
    %123 = vector.broadcast %cst_35 : f32 to vector<2x32xf32>
    %124 = arith.mulf %123, %122 : vector<2x32xf32>
    %cst_36 = arith.constant 1.000000e+00 : f32
    %125 = vector.broadcast %cst_36 : f32 to vector<2x32xf32>
    %126 = arith.subf %124, %125 : vector<2x32xf32>
    %127 = vector.extract_strided_slice %119 {offsets = [0, 96], sizes = [2, 32], strides = [1, 1]} : vector<2x128xf32> to vector<2x32xf32>
    %128 = arith.mulf %121, %83 : vector<2x32xf32>
    %129 = arith.mulf %120, %126 : vector<2x32xf32>
    %130 = arith.addf %128, %129 : vector<2x32xf32>
    %131 = math.tanh %130 : vector<2x32xf32>
    %132 = arith.mulf %127, %131 : vector<2x32xf32>
    %133 = arith.truncf %132 : vector<2x32xf32> to vector<2x32xbf16>
    %cst_37 = arith.constant dense<0.000000e+00> : vector<2x128xf32>
    %134 = tpu.matmul %133, %5, %cst_37 {dimension_numbers = #tpu.dot_dimension_numbers<[1], [0], [0], [1], [0, 0, 1, 1], [], []>} : vector<2x32xbf16>, vector<32x128xbf16>, vector<2x128xf32> -> vector<2x128xf32>
    %135 = arith.truncf %110 : vector<2x32xf32> to vector<2x32xbf16>
    %cst_38 = arith.constant dense<0.000000e+00> : vector<2x128xf32>
    %136 = tpu.matmul %135, %7, %cst_38 {dimension_numbers = #tpu.dot_dimension_numbers<[1], [0], [0], [1], [0, 0, 1, 1], [], []>} : vector<2x32xbf16>, vector<32x128xbf16>, vector<2x128xf32> -> vector<2x128xf32>
    %137 = arith.addf %134, %136 : vector<2x128xf32>
    %138 = vector.broadcast %8 : vector<1x128xf32> to vector<2x128xf32>
    %139 = arith.addf %137, %138 : vector<2x128xf32>
    %140 = arith.negf %139 : vector<2x128xf32>
    %141 = math.exp %140 : vector<2x128xf32>
    %cst_39 = arith.constant 1.000000e+00 : f32
    %142 = vector.broadcast %cst_39 : f32 to vector<2x128xf32>
    %143 = arith.addf %142, %141 : vector<2x128xf32>
    %144 = arith.divf %142, %143 : vector<2x128xf32>
    %145 = vector.extract_strided_slice %144 {offsets = [0, 0], sizes = [2, 32], strides = [1, 1]} : vector<2x128xf32> to vector<2x32xf32>
    %146 = vector.extract_strided_slice %144 {offsets = [0, 32], sizes = [2, 32], strides = [1, 1]} : vector<2x128xf32> to vector<2x32xf32>
    %147 = vector.extract_strided_slice %144 {offsets = [0, 64], sizes = [2, 32], strides = [1, 1]} : vector<2x128xf32> to vector<2x32xf32>
    %cst_40 = arith.constant 2.000000e+00 : f32
    %148 = vector.broadcast %cst_40 : f32 to vector<2x32xf32>
    %149 = arith.mulf %148, %147 : vector<2x32xf32>
    %cst_41 = arith.constant 1.000000e+00 : f32
    %150 = vector.broadcast %cst_41 : f32 to vector<2x32xf32>
    %151 = arith.subf %149, %150 : vector<2x32xf32>
    %152 = vector.extract_strided_slice %144 {offsets = [0, 96], sizes = [2, 32], strides = [1, 1]} : vector<2x128xf32> to vector<2x32xf32>
    %153 = arith.mulf %146, %108 : vector<2x32xf32>
    %154 = arith.mulf %145, %151 : vector<2x32xf32>
    %155 = arith.addf %153, %154 : vector<2x32xf32>
    %156 = math.tanh %155 : vector<2x32xf32>
    %157 = arith.mulf %152, %156 : vector<2x32xf32>
    %158 = vector.extract_strided_slice %12 {offsets = [6, 0], sizes = [2, 128], strides = [1, 1]} : vector<16x128xf32> to vector<2x128xf32>
    %159 = arith.truncf %132 : vector<2x32xf32> to vector<2x32xbf16>
    %cst_42 = arith.constant dense<0.000000e+00> : vector<2x128xf32>
    %160 = tpu.matmul %159, %1, %cst_42 {dimension_numbers = #tpu.dot_dimension_numbers<[1], [0], [0], [1], [0, 0, 1, 1], [], []>} : vector<2x32xbf16>, vector<32x128xbf16>, vector<2x128xf32> -> vector<2x128xf32>
    %161 = arith.addf %158, %160 : vector<2x128xf32>
    %162 = arith.negf %161 : vector<2x128xf32>
    %163 = math.exp %162 : vector<2x128xf32>
    %cst_43 = arith.constant 1.000000e+00 : f32
    %164 = vector.broadcast %cst_43 : f32 to vector<2x128xf32>
    %165 = arith.addf %164, %163 : vector<2x128xf32>
    %166 = arith.divf %164, %165 : vector<2x128xf32>
    %167 = vector.extract_strided_slice %166 {offsets = [0, 0], sizes = [2, 32], strides = [1, 1]} : vector<2x128xf32> to vector<2x32xf32>
    %168 = vector.extract_strided_slice %166 {offsets = [0, 32], sizes = [2, 32], strides = [1, 1]} : vector<2x128xf32> to vector<2x32xf32>
    %169 = vector.extract_strided_slice %166 {offsets = [0, 64], sizes = [2, 32], strides = [1, 1]} : vector<2x128xf32> to vector<2x32xf32>
    %cst_44 = arith.constant 2.000000e+00 : f32
    %170 = vector.broadcast %cst_44 : f32 to vector<2x32xf32>
    %171 = arith.mulf %170, %169 : vector<2x32xf32>
    %cst_45 = arith.constant 1.000000e+00 : f32
    %172 = vector.broadcast %cst_45 : f32 to vector<2x32xf32>
    %173 = arith.subf %171, %172 : vector<2x32xf32>
    %174 = vector.extract_strided_slice %166 {offsets = [0, 96], sizes = [2, 32], strides = [1, 1]} : vector<2x128xf32> to vector<2x32xf32>
    %175 = arith.mulf %168, %130 : vector<2x32xf32>
    %176 = arith.mulf %167, %173 : vector<2x32xf32>
    %177 = arith.addf %175, %176 : vector<2x32xf32>
    %178 = math.tanh %177 : vector<2x32xf32>
    %179 = arith.mulf %174, %178 : vector<2x32xf32>
    %180 = arith.truncf %179 : vector<2x32xf32> to vector<2x32xbf16>
    %cst_46 = arith.constant dense<0.000000e+00> : vector<2x128xf32>
    %181 = tpu.matmul %180, %5, %cst_46 {dimension_numbers = #tpu.dot_dimension_numbers<[1], [0], [0], [1], [0, 0, 1, 1], [], []>} : vector<2x32xbf16>, vector<32x128xbf16>, vector<2x128xf32> -> vector<2x128xf32>
    %182 = arith.truncf %157 : vector<2x32xf32> to vector<2x32xbf16>
    %cst_47 = arith.constant dense<0.000000e+00> : vector<2x128xf32>
    %183 = tpu.matmul %182, %7, %cst_47 {dimension_numbers = #tpu.dot_dimension_numbers<[1], [0], [0], [1], [0, 0, 1, 1], [], []>} : vector<2x32xbf16>, vector<32x128xbf16>, vector<2x128xf32> -> vector<2x128xf32>
    %184 = arith.addf %181, %183 : vector<2x128xf32>
    %185 = vector.broadcast %8 : vector<1x128xf32> to vector<2x128xf32>
    %186 = arith.addf %184, %185 : vector<2x128xf32>
    %187 = arith.negf %186 : vector<2x128xf32>
    %188 = math.exp %187 : vector<2x128xf32>
    %cst_48 = arith.constant 1.000000e+00 : f32
    %189 = vector.broadcast %cst_48 : f32 to vector<2x128xf32>
    %190 = arith.addf %189, %188 : vector<2x128xf32>
    %191 = arith.divf %189, %190 : vector<2x128xf32>
    %192 = vector.extract_strided_slice %191 {offsets = [0, 0], sizes = [2, 32], strides = [1, 1]} : vector<2x128xf32> to vector<2x32xf32>
    %193 = vector.extract_strided_slice %191 {offsets = [0, 32], sizes = [2, 32], strides = [1, 1]} : vector<2x128xf32> to vector<2x32xf32>
    %194 = vector.extract_strided_slice %191 {offsets = [0, 64], sizes = [2, 32], strides = [1, 1]} : vector<2x128xf32> to vector<2x32xf32>
    %cst_49 = arith.constant 2.000000e+00 : f32
    %195 = vector.broadcast %cst_49 : f32 to vector<2x32xf32>
    %196 = arith.mulf %195, %194 : vector<2x32xf32>
    %cst_50 = arith.constant 1.000000e+00 : f32
    %197 = vector.broadcast %cst_50 : f32 to vector<2x32xf32>
    %198 = arith.subf %196, %197 : vector<2x32xf32>
    %199 = vector.extract_strided_slice %191 {offsets = [0, 96], sizes = [2, 32], strides = [1, 1]} : vector<2x128xf32> to vector<2x32xf32>
    %200 = arith.mulf %193, %155 : vector<2x32xf32>
    %201 = arith.mulf %192, %198 : vector<2x32xf32>
    %202 = arith.addf %200, %201 : vector<2x32xf32>
    %203 = math.tanh %202 : vector<2x32xf32>
    %204 = arith.mulf %199, %203 : vector<2x32xf32>
    %205 = vector.extract_strided_slice %12 {offsets = [8, 0], sizes = [2, 128], strides = [1, 1]} : vector<16x128xf32> to vector<2x128xf32>
    %206 = arith.truncf %179 : vector<2x32xf32> to vector<2x32xbf16>
    %cst_51 = arith.constant dense<0.000000e+00> : vector<2x128xf32>
    %207 = tpu.matmul %206, %1, %cst_51 {dimension_numbers = #tpu.dot_dimension_numbers<[1], [0], [0], [1], [0, 0, 1, 1], [], []>} : vector<2x32xbf16>, vector<32x128xbf16>, vector<2x128xf32> -> vector<2x128xf32>
    %208 = arith.addf %205, %207 : vector<2x128xf32>
    %209 = arith.negf %208 : vector<2x128xf32>
    %210 = math.exp %209 : vector<2x128xf32>
    %cst_52 = arith.constant 1.000000e+00 : f32
    %211 = vector.broadcast %cst_52 : f32 to vector<2x128xf32>
    %212 = arith.addf %211, %210 : vector<2x128xf32>
    %213 = arith.divf %211, %212 : vector<2x128xf32>
    %214 = vector.extract_strided_slice %213 {offsets = [0, 0], sizes = [2, 32], strides = [1, 1]} : vector<2x128xf32> to vector<2x32xf32>
    %215 = vector.extract_strided_slice %213 {offsets = [0, 32], sizes = [2, 32], strides = [1, 1]} : vector<2x128xf32> to vector<2x32xf32>
    %216 = vector.extract_strided_slice %213 {offsets = [0, 64], sizes = [2, 32], strides = [1, 1]} : vector<2x128xf32> to vector<2x32xf32>
    %cst_53 = arith.constant 2.000000e+00 : f32
    %217 = vector.broadcast %cst_53 : f32 to vector<2x32xf32>
    %218 = arith.mulf %217, %216 : vector<2x32xf32>
    %cst_54 = arith.constant 1.000000e+00 : f32
    %219 = vector.broadcast %cst_54 : f32 to vector<2x32xf32>
    %220 = arith.subf %218, %219 : vector<2x32xf32>
    %221 = vector.extract_strided_slice %213 {offsets = [0, 96], sizes = [2, 32], strides = [1, 1]} : vector<2x128xf32> to vector<2x32xf32>
    %222 = arith.mulf %215, %177 : vector<2x32xf32>
    %223 = arith.mulf %214, %220 : vector<2x32xf32>
    %224 = arith.addf %222, %223 : vector<2x32xf32>
    %225 = math.tanh %224 : vector<2x32xf32>
    %226 = arith.mulf %221, %225 : vector<2x32xf32>
    %227 = arith.truncf %226 : vector<2x32xf32> to vector<2x32xbf16>
    %cst_55 = arith.constant dense<0.000000e+00> : vector<2x128xf32>
    %228 = tpu.matmul %227, %5, %cst_55 {dimension_numbers = #tpu.dot_dimension_numbers<[1], [0], [0], [1], [0, 0, 1, 1], [], []>} : vector<2x32xbf16>, vector<32x128xbf16>, vector<2x128xf32> -> vector<2x128xf32>
    %229 = arith.truncf %204 : vector<2x32xf32> to vector<2x32xbf16>
    %cst_56 = arith.constant dense<0.000000e+00> : vector<2x128xf32>
    %230 = tpu.matmul %229, %7, %cst_56 {dimension_numbers = #tpu.dot_dimension_numbers<[1], [0], [0], [1], [0, 0, 1, 1], [], []>} : vector<2x32xbf16>, vector<32x128xbf16>, vector<2x128xf32> -> vector<2x128xf32>
    %231 = arith.addf %228, %230 : vector<2x128xf32>
    %232 = vector.broadcast %8 : vector<1x128xf32> to vector<2x128xf32>
    %233 = arith.addf %231, %232 : vector<2x128xf32>
    %234 = arith.negf %233 : vector<2x128xf32>
    %235 = math.exp %234 : vector<2x128xf32>
    %cst_57 = arith.constant 1.000000e+00 : f32
    %236 = vector.broadcast %cst_57 : f32 to vector<2x128xf32>
    %237 = arith.addf %236, %235 : vector<2x128xf32>
    %238 = arith.divf %236, %237 : vector<2x128xf32>
    %239 = vector.extract_strided_slice %238 {offsets = [0, 0], sizes = [2, 32], strides = [1, 1]} : vector<2x128xf32> to vector<2x32xf32>
    %240 = vector.extract_strided_slice %238 {offsets = [0, 32], sizes = [2, 32], strides = [1, 1]} : vector<2x128xf32> to vector<2x32xf32>
    %241 = vector.extract_strided_slice %238 {offsets = [0, 64], sizes = [2, 32], strides = [1, 1]} : vector<2x128xf32> to vector<2x32xf32>
    %cst_58 = arith.constant 2.000000e+00 : f32
    %242 = vector.broadcast %cst_58 : f32 to vector<2x32xf32>
    %243 = arith.mulf %242, %241 : vector<2x32xf32>
    %cst_59 = arith.constant 1.000000e+00 : f32
    %244 = vector.broadcast %cst_59 : f32 to vector<2x32xf32>
    %245 = arith.subf %243, %244 : vector<2x32xf32>
    %246 = vector.extract_strided_slice %238 {offsets = [0, 96], sizes = [2, 32], strides = [1, 1]} : vector<2x128xf32> to vector<2x32xf32>
    %247 = arith.mulf %240, %202 : vector<2x32xf32>
    %248 = arith.mulf %239, %245 : vector<2x32xf32>
    %249 = arith.addf %247, %248 : vector<2x32xf32>
    %250 = math.tanh %249 : vector<2x32xf32>
    %251 = arith.mulf %246, %250 : vector<2x32xf32>
    %252 = vector.extract_strided_slice %12 {offsets = [10, 0], sizes = [2, 128], strides = [1, 1]} : vector<16x128xf32> to vector<2x128xf32>
    %253 = arith.truncf %226 : vector<2x32xf32> to vector<2x32xbf16>
    %cst_60 = arith.constant dense<0.000000e+00> : vector<2x128xf32>
    %254 = tpu.matmul %253, %1, %cst_60 {dimension_numbers = #tpu.dot_dimension_numbers<[1], [0], [0], [1], [0, 0, 1, 1], [], []>} : vector<2x32xbf16>, vector<32x128xbf16>, vector<2x128xf32> -> vector<2x128xf32>
    %255 = arith.addf %252, %254 : vector<2x128xf32>
    %256 = arith.negf %255 : vector<2x128xf32>
    %257 = math.exp %256 : vector<2x128xf32>
    %cst_61 = arith.constant 1.000000e+00 : f32
    %258 = vector.broadcast %cst_61 : f32 to vector<2x128xf32>
    %259 = arith.addf %258, %257 : vector<2x128xf32>
    %260 = arith.divf %258, %259 : vector<2x128xf32>
    %261 = vector.extract_strided_slice %260 {offsets = [0, 0], sizes = [2, 32], strides = [1, 1]} : vector<2x128xf32> to vector<2x32xf32>
    %262 = vector.extract_strided_slice %260 {offsets = [0, 32], sizes = [2, 32], strides = [1, 1]} : vector<2x128xf32> to vector<2x32xf32>
    %263 = vector.extract_strided_slice %260 {offsets = [0, 64], sizes = [2, 32], strides = [1, 1]} : vector<2x128xf32> to vector<2x32xf32>
    %cst_62 = arith.constant 2.000000e+00 : f32
    %264 = vector.broadcast %cst_62 : f32 to vector<2x32xf32>
    %265 = arith.mulf %264, %263 : vector<2x32xf32>
    %cst_63 = arith.constant 1.000000e+00 : f32
    %266 = vector.broadcast %cst_63 : f32 to vector<2x32xf32>
    %267 = arith.subf %265, %266 : vector<2x32xf32>
    %268 = vector.extract_strided_slice %260 {offsets = [0, 96], sizes = [2, 32], strides = [1, 1]} : vector<2x128xf32> to vector<2x32xf32>
    %269 = arith.mulf %262, %224 : vector<2x32xf32>
    %270 = arith.mulf %261, %267 : vector<2x32xf32>
    %271 = arith.addf %269, %270 : vector<2x32xf32>
    %272 = math.tanh %271 : vector<2x32xf32>
    %273 = arith.mulf %268, %272 : vector<2x32xf32>
    %274 = arith.truncf %273 : vector<2x32xf32> to vector<2x32xbf16>
    %cst_64 = arith.constant dense<0.000000e+00> : vector<2x128xf32>
    %275 = tpu.matmul %274, %5, %cst_64 {dimension_numbers = #tpu.dot_dimension_numbers<[1], [0], [0], [1], [0, 0, 1, 1], [], []>} : vector<2x32xbf16>, vector<32x128xbf16>, vector<2x128xf32> -> vector<2x128xf32>
    %276 = arith.truncf %251 : vector<2x32xf32> to vector<2x32xbf16>
    %cst_65 = arith.constant dense<0.000000e+00> : vector<2x128xf32>
    %277 = tpu.matmul %276, %7, %cst_65 {dimension_numbers = #tpu.dot_dimension_numbers<[1], [0], [0], [1], [0, 0, 1, 1], [], []>} : vector<2x32xbf16>, vector<32x128xbf16>, vector<2x128xf32> -> vector<2x128xf32>
    %278 = arith.addf %275, %277 : vector<2x128xf32>
    %279 = vector.broadcast %8 : vector<1x128xf32> to vector<2x128xf32>
    %280 = arith.addf %278, %279 : vector<2x128xf32>
    %281 = arith.negf %280 : vector<2x128xf32>
    %282 = math.exp %281 : vector<2x128xf32>
    %cst_66 = arith.constant 1.000000e+00 : f32
    %283 = vector.broadcast %cst_66 : f32 to vector<2x128xf32>
    %284 = arith.addf %283, %282 : vector<2x128xf32>
    %285 = arith.divf %283, %284 : vector<2x128xf32>
    %286 = vector.extract_strided_slice %285 {offsets = [0, 0], sizes = [2, 32], strides = [1, 1]} : vector<2x128xf32> to vector<2x32xf32>
    %287 = vector.extract_strided_slice %285 {offsets = [0, 32], sizes = [2, 32], strides = [1, 1]} : vector<2x128xf32> to vector<2x32xf32>
    %288 = vector.extract_strided_slice %285 {offsets = [0, 64], sizes = [2, 32], strides = [1, 1]} : vector<2x128xf32> to vector<2x32xf32>
    %cst_67 = arith.constant 2.000000e+00 : f32
    %289 = vector.broadcast %cst_67 : f32 to vector<2x32xf32>
    %290 = arith.mulf %289, %288 : vector<2x32xf32>
    %cst_68 = arith.constant 1.000000e+00 : f32
    %291 = vector.broadcast %cst_68 : f32 to vector<2x32xf32>
    %292 = arith.subf %290, %291 : vector<2x32xf32>
    %293 = vector.extract_strided_slice %285 {offsets = [0, 96], sizes = [2, 32], strides = [1, 1]} : vector<2x128xf32> to vector<2x32xf32>
    %294 = arith.mulf %287, %249 : vector<2x32xf32>
    %295 = arith.mulf %286, %292 : vector<2x32xf32>
    %296 = arith.addf %294, %295 : vector<2x32xf32>
    %297 = math.tanh %296 : vector<2x32xf32>
    %298 = arith.mulf %293, %297 : vector<2x32xf32>
    %299 = vector.extract_strided_slice %12 {offsets = [12, 0], sizes = [2, 128], strides = [1, 1]} : vector<16x128xf32> to vector<2x128xf32>
    %300 = arith.truncf %273 : vector<2x32xf32> to vector<2x32xbf16>
    %cst_69 = arith.constant dense<0.000000e+00> : vector<2x128xf32>
    %301 = tpu.matmul %300, %1, %cst_69 {dimension_numbers = #tpu.dot_dimension_numbers<[1], [0], [0], [1], [0, 0, 1, 1], [], []>} : vector<2x32xbf16>, vector<32x128xbf16>, vector<2x128xf32> -> vector<2x128xf32>
    %302 = arith.addf %299, %301 : vector<2x128xf32>
    %303 = arith.negf %302 : vector<2x128xf32>
    %304 = math.exp %303 : vector<2x128xf32>
    %cst_70 = arith.constant 1.000000e+00 : f32
    %305 = vector.broadcast %cst_70 : f32 to vector<2x128xf32>
    %306 = arith.addf %305, %304 : vector<2x128xf32>
    %307 = arith.divf %305, %306 : vector<2x128xf32>
    %308 = vector.extract_strided_slice %307 {offsets = [0, 0], sizes = [2, 32], strides = [1, 1]} : vector<2x128xf32> to vector<2x32xf32>
    %309 = vector.extract_strided_slice %307 {offsets = [0, 32], sizes = [2, 32], strides = [1, 1]} : vector<2x128xf32> to vector<2x32xf32>
    %310 = vector.extract_strided_slice %307 {offsets = [0, 64], sizes = [2, 32], strides = [1, 1]} : vector<2x128xf32> to vector<2x32xf32>
    %cst_71 = arith.constant 2.000000e+00 : f32
    %311 = vector.broadcast %cst_71 : f32 to vector<2x32xf32>
    %312 = arith.mulf %311, %310 : vector<2x32xf32>
    %cst_72 = arith.constant 1.000000e+00 : f32
    %313 = vector.broadcast %cst_72 : f32 to vector<2x32xf32>
    %314 = arith.subf %312, %313 : vector<2x32xf32>
    %315 = vector.extract_strided_slice %307 {offsets = [0, 96], sizes = [2, 32], strides = [1, 1]} : vector<2x128xf32> to vector<2x32xf32>
    %316 = arith.mulf %309, %271 : vector<2x32xf32>
    %317 = arith.mulf %308, %314 : vector<2x32xf32>
    %318 = arith.addf %316, %317 : vector<2x32xf32>
    %319 = math.tanh %318 : vector<2x32xf32>
    %320 = arith.mulf %315, %319 : vector<2x32xf32>
    %321 = arith.truncf %320 : vector<2x32xf32> to vector<2x32xbf16>
    %cst_73 = arith.constant dense<0.000000e+00> : vector<2x128xf32>
    %322 = tpu.matmul %321, %5, %cst_73 {dimension_numbers = #tpu.dot_dimension_numbers<[1], [0], [0], [1], [0, 0, 1, 1], [], []>} : vector<2x32xbf16>, vector<32x128xbf16>, vector<2x128xf32> -> vector<2x128xf32>
    %323 = arith.truncf %298 : vector<2x32xf32> to vector<2x32xbf16>
    %cst_74 = arith.constant dense<0.000000e+00> : vector<2x128xf32>
    %324 = tpu.matmul %323, %7, %cst_74 {dimension_numbers = #tpu.dot_dimension_numbers<[1], [0], [0], [1], [0, 0, 1, 1], [], []>} : vector<2x32xbf16>, vector<32x128xbf16>, vector<2x128xf32> -> vector<2x128xf32>
    %325 = arith.addf %322, %324 : vector<2x128xf32>
    %326 = vector.broadcast %8 : vector<1x128xf32> to vector<2x128xf32>
    %327 = arith.addf %325, %326 : vector<2x128xf32>
    %328 = arith.negf %327 : vector<2x128xf32>
    %329 = math.exp %328 : vector<2x128xf32>
    %cst_75 = arith.constant 1.000000e+00 : f32
    %330 = vector.broadcast %cst_75 : f32 to vector<2x128xf32>
    %331 = arith.addf %330, %329 : vector<2x128xf32>
    %332 = arith.divf %330, %331 : vector<2x128xf32>
    %333 = vector.extract_strided_slice %332 {offsets = [0, 0], sizes = [2, 32], strides = [1, 1]} : vector<2x128xf32> to vector<2x32xf32>
    %334 = vector.extract_strided_slice %332 {offsets = [0, 32], sizes = [2, 32], strides = [1, 1]} : vector<2x128xf32> to vector<2x32xf32>
    %335 = vector.extract_strided_slice %332 {offsets = [0, 64], sizes = [2, 32], strides = [1, 1]} : vector<2x128xf32> to vector<2x32xf32>
    %cst_76 = arith.constant 2.000000e+00 : f32
    %336 = vector.broadcast %cst_76 : f32 to vector<2x32xf32>
    %337 = arith.mulf %336, %335 : vector<2x32xf32>
    %cst_77 = arith.constant 1.000000e+00 : f32
    %338 = vector.broadcast %cst_77 : f32 to vector<2x32xf32>
    %339 = arith.subf %337, %338 : vector<2x32xf32>
    %340 = vector.extract_strided_slice %332 {offsets = [0, 96], sizes = [2, 32], strides = [1, 1]} : vector<2x128xf32> to vector<2x32xf32>
    %341 = arith.mulf %334, %296 : vector<2x32xf32>
    %342 = arith.mulf %333, %339 : vector<2x32xf32>
    %343 = arith.addf %341, %342 : vector<2x32xf32>
    %344 = math.tanh %343 : vector<2x32xf32>
    %345 = arith.mulf %340, %344 : vector<2x32xf32>
    %346 = vector.extract_strided_slice %12 {offsets = [14, 0], sizes = [2, 128], strides = [1, 1]} : vector<16x128xf32> to vector<2x128xf32>
    %347 = arith.truncf %320 : vector<2x32xf32> to vector<2x32xbf16>
    %cst_78 = arith.constant dense<0.000000e+00> : vector<2x128xf32>
    %348 = tpu.matmul %347, %1, %cst_78 {dimension_numbers = #tpu.dot_dimension_numbers<[1], [0], [0], [1], [0, 0, 1, 1], [], []>} : vector<2x32xbf16>, vector<32x128xbf16>, vector<2x128xf32> -> vector<2x128xf32>
    %349 = arith.addf %346, %348 : vector<2x128xf32>
    %350 = arith.negf %349 : vector<2x128xf32>
    %351 = math.exp %350 : vector<2x128xf32>
    %cst_79 = arith.constant 1.000000e+00 : f32
    %352 = vector.broadcast %cst_79 : f32 to vector<2x128xf32>
    %353 = arith.addf %352, %351 : vector<2x128xf32>
    %354 = arith.divf %352, %353 : vector<2x128xf32>
    %355 = vector.extract_strided_slice %354 {offsets = [0, 0], sizes = [2, 32], strides = [1, 1]} : vector<2x128xf32> to vector<2x32xf32>
    %356 = vector.extract_strided_slice %354 {offsets = [0, 32], sizes = [2, 32], strides = [1, 1]} : vector<2x128xf32> to vector<2x32xf32>
    %357 = vector.extract_strided_slice %354 {offsets = [0, 64], sizes = [2, 32], strides = [1, 1]} : vector<2x128xf32> to vector<2x32xf32>
    %cst_80 = arith.constant 2.000000e+00 : f32
    %358 = vector.broadcast %cst_80 : f32 to vector<2x32xf32>
    %359 = arith.mulf %358, %357 : vector<2x32xf32>
    %cst_81 = arith.constant 1.000000e+00 : f32
    %360 = vector.broadcast %cst_81 : f32 to vector<2x32xf32>
    %361 = arith.subf %359, %360 : vector<2x32xf32>
    %362 = vector.extract_strided_slice %354 {offsets = [0, 96], sizes = [2, 32], strides = [1, 1]} : vector<2x128xf32> to vector<2x32xf32>
    %363 = arith.mulf %356, %318 : vector<2x32xf32>
    %364 = arith.mulf %355, %361 : vector<2x32xf32>
    %365 = arith.addf %363, %364 : vector<2x32xf32>
    %366 = math.tanh %365 : vector<2x32xf32>
    %367 = arith.mulf %362, %366 : vector<2x32xf32>
    %368 = arith.truncf %367 : vector<2x32xf32> to vector<2x32xbf16>
    %cst_82 = arith.constant dense<0.000000e+00> : vector<2x128xf32>
    %369 = tpu.matmul %368, %5, %cst_82 {dimension_numbers = #tpu.dot_dimension_numbers<[1], [0], [0], [1], [0, 0, 1, 1], [], []>} : vector<2x32xbf16>, vector<32x128xbf16>, vector<2x128xf32> -> vector<2x128xf32>
    %370 = arith.truncf %345 : vector<2x32xf32> to vector<2x32xbf16>
    %cst_83 = arith.constant dense<0.000000e+00> : vector<2x128xf32>
    %371 = tpu.matmul %370, %7, %cst_83 {dimension_numbers = #tpu.dot_dimension_numbers<[1], [0], [0], [1], [0, 0, 1, 1], [], []>} : vector<2x32xbf16>, vector<32x128xbf16>, vector<2x128xf32> -> vector<2x128xf32>
    %372 = arith.addf %369, %371 : vector<2x128xf32>
    %373 = vector.broadcast %8 : vector<1x128xf32> to vector<2x128xf32>
    %374 = arith.addf %372, %373 : vector<2x128xf32>
    %375 = arith.negf %374 : vector<2x128xf32>
    %376 = math.exp %375 : vector<2x128xf32>
    %cst_84 = arith.constant 1.000000e+00 : f32
    %377 = vector.broadcast %cst_84 : f32 to vector<2x128xf32>
    %378 = arith.addf %377, %376 : vector<2x128xf32>
    %379 = arith.divf %377, %378 : vector<2x128xf32>
    %380 = vector.extract_strided_slice %379 {offsets = [0, 0], sizes = [2, 32], strides = [1, 1]} : vector<2x128xf32> to vector<2x32xf32>
    %381 = vector.extract_strided_slice %379 {offsets = [0, 32], sizes = [2, 32], strides = [1, 1]} : vector<2x128xf32> to vector<2x32xf32>
    %382 = vector.extract_strided_slice %379 {offsets = [0, 64], sizes = [2, 32], strides = [1, 1]} : vector<2x128xf32> to vector<2x32xf32>
    %cst_85 = arith.constant 2.000000e+00 : f32
    %383 = vector.broadcast %cst_85 : f32 to vector<2x32xf32>
    %384 = arith.mulf %383, %382 : vector<2x32xf32>
    %cst_86 = arith.constant 1.000000e+00 : f32
    %385 = vector.broadcast %cst_86 : f32 to vector<2x32xf32>
    %386 = arith.subf %384, %385 : vector<2x32xf32>
    %387 = vector.extract_strided_slice %379 {offsets = [0, 96], sizes = [2, 32], strides = [1, 1]} : vector<2x128xf32> to vector<2x32xf32>
    %388 = arith.mulf %381, %343 : vector<2x32xf32>
    %389 = arith.mulf %380, %386 : vector<2x32xf32>
    %390 = arith.addf %388, %389 : vector<2x32xf32>
    %391 = math.tanh %390 : vector<2x32xf32>
    %392 = arith.mulf %387, %391 : vector<2x32xf32>
    %393 = vector.extract_strided_slice %2 {offsets = [2, 0], sizes = [1, 24], strides = [1, 1]} : vector<3x128xf32> to vector<1x24xf32>
    %394 = arith.truncf %392 : vector<2x32xf32> to vector<2x32xbf16>
    %c0_87 = arith.constant 0 : index
    %c0_88 = arith.constant 0 : index
    %395 = vector.load %arg4[%c0_87, %c0_88] : memref<32x24xbf16, #tpu.memory_space<vmem>>, vector<32x24xbf16>
    %cst_89 = arith.constant dense<0.000000e+00> : vector<2x24xf32>
    %396 = tpu.matmul %394, %395, %cst_89 {dimension_numbers = #tpu.dot_dimension_numbers<[1], [0], [0], [1], [0, 0, 1, 1], [], []>} : vector<2x32xbf16>, vector<32x24xbf16>, vector<2x24xf32> -> vector<2x24xf32>
    %397 = vector.broadcast %393 : vector<1x24xf32> to vector<2x24xf32>
    %398 = arith.addf %396, %397 : vector<2x24xf32>
    %c0_90 = arith.constant 0 : index
    %c0_91 = arith.constant 0 : index
    %399 = vector.load %arg5[%c0_90, %c0_91] : memref<2x24xf32, #tpu.memory_space<vmem>>, vector<2x24xf32>
    tpu.vector_store %arg5[%c0_90, %c0_91], %398 {strides = array<i32>} : memref<2x24xf32, #tpu.memory_space<vmem>>, vector<2x24xf32>,
    return
  }
}

</mosaic_0001>

<bundles_post_ra>
// kernel: lstm_model2_forward.1
= control target key start
LH: loop header
LB: loop body
LE: loop exit
PB: predicated region body
PF: predicated region fallthrough
CT: control target
= control target key end

     0   :  { %v2244_v1 = vmov 0.0   ;;  %vm2245_vm0 = vmmov 0   ;;  %vm54_vm1 = vcmask 130048   ;;  %s2673_s0 = inlined_call_operand.vmem [shape: bf16[16,16], index: 0, kind: input, shape index: {}]   ;;  %s2674_s1 = inlined_call_operand.vmem [shape: bf16[48,128], index: 1, kind: input, shape index: {}]   ;;  %s2675_s2 = inlined_call_operand.vmem [shape: bf16[1,64,128], index: 2, kind: input, shape index: {}]   ;;  %s2676_s3 = inlined_call_operand.vmem [shape: f32[3,128], index: 3, kind: input, shape index: {}]   ;;  %s2677_s4 = inlined_call_operand.vmem [shape: bf16[32,24], index: 4, kind: input, shape index: {}]   ;;  %s2678_s5 = inlined_call_operand.hbm [shape: f32[2,24], index: 5, kind: output, shape index: {}]  }
   0x1   :  { %v2107_v0 = vld [vmem:[%s2674_s1] sm:$0xff]   ;;  %1895 = vmatprep.subr.bf16.mxu0 %v2244_v1  ;;  %1901 = vmatprep.subr.bf16.mxu1 %v2244_v1  ;;  %v2288_v2 = vld [vmem:[%s2674_s1 + $0x8] sm:$0xff]   ;;  %v2299_v4 = vld [vmem:[%s2674_s1 + $0x10] sm:$0xff]  }
   0x2   :  { %1896 = vmatpush3.bf16.msra.mxu0 %v2107_v0  ;;  %1897 = vmatprep.mubr.msk.bf16.mxu0 %vm2245_vm0, %v2244_v1  ;;  %v2109_v3 = vld [vmem:[%s2673_s0] sm:$0xff]  }
   0x3   :  { %1902 = vmatpush3.bf16.msra.mxu1 %v2288_v2  ;;  %1905 = vmatprep.mubr.msk.bf16.mxu1 %vm2245_vm0, %v2244_v1 }
   0x4   :  { %1903 = vmatprep.subr.bf16.mxu1 %v2244_v1  ;;  %1909 = vmatprep.subr.bf16.mxu0 %v2244_v1 }
   0x5   :  { %1898 = vmatmul.mubr.msk.bf16.vlgmr.msra.gmra.mrb[0].mxu0 %vm54_vm1, %v2109_v3 }
   0x6   :  { %1913 = vmatprep.mubr.msk.bf16.mxu0 %vm2245_vm0, %v2244_v1 }
   0x7   :  { %1904 = vmatpush3.bf16.msra.mxu1 %v2299_v4 }
   0x8   :  { %1917 = vmatprep.subr.bf16.mxu1 %v2244_v1 }
   0x9   :  { %10 = vsyncpa [#allocation3], 0  ;;  %v2246_v5 = vmov 0   ;;  %v39_v6 = vlaneseq  ;;  %v2317_v9 = vld [vmem:[%s2676_s3] sm:$0x7]  ;;  %s2247_s27 = smov 64  }
   0xa   :  { %1906 = vmatmul.mubr.bf16.vlgmr.msra.gmra.mrb[0].mxu1 %v2246_v5  ;;  %s2248_s28 = smov 32   ;;  %v2333_v33 = vld [vmem:[%s2675_s2 + $0x10] sm:$0xff]   ;;  %v2338_v34 = vld [vmem:[%s2675_s2] sm:$0xff]   ;;  %v2344_v35 = vld [vmem:[%s2675_s2 + $0x18] sm:$0xff]   ;;  %vm111_vm2 = vcmask 261120   ;;  %vm1736_vm3 = vcmask 189440  }
   0xb   :  { %1921 = vmatprep.mubr.msk.bf16.mxu1 %vm2245_vm0, %v2244_v1  ;;  %v2311_v7 = vshrl.u32 %v39_v6, 7  ;;  %1910 = vmatpush3.bf16.msra.mxu0 %v2333_v33  ;;  %v2350_v36 = vld [vmem:[%s2675_s2 + $0x8] sm:$0xff]  }
   0xc   :  { %1918 = vmatpush3.bf16.msra.mxu1 %v2338_v34  ;;  %1911 = vmatprep.subr.bf16.mxu0 %v2244_v1 }
   0xd   :  { %v41_v8 = vsub.s32 0, %v2311_v7  ;;  %1919 = vmatprep.subr.bf16.mxu1 %v2244_v1  ;;  %v294_v46 = vsub.s32 1, %v2311_v7 }
   0xf   :  { %v42_v10 = vrot.slane %v2317_v9, %v41_v8  ;;  %1912 = vmatpush3.bf16.msra.mxu0 %v2344_v35  ;;  %v2382_v47 = vrot.slane %v2317_v9, %v294_v46 }
  0x10   :  { %1920 = vmatpush3.bf16.msra.mxu1 %v2350_v36  ;;  %1925 = vmatprep.subr.bf16.mxu0 %v2244_v1 }
  0x11   :  { %1933 = vmatprep.subr.bf16.mxu1 %v2244_v1 }
  0x12   :  { %1914 = vmatmul.mubr.bf16.vlgmr.msra.gmra.mrb[4].mxu0 %v2246_v5 }
  0x13   :  { %1926 = vmatpush3.bf16.msra.mxu0 %v2288_v2  ;;  %1929 = vmatprep.mubr.msk.bf16.mxu0 %vm2245_vm0, %v2244_v1 }
  0x14   :  { %1927 = vmatprep.subr.bf16.mxu0 %v2244_v1 }
  0x17   :  { %1928 = vmatpush3.bf16.msra.mxu0 %v2299_v4 }
  0x18   :  { %1941 = vmatprep.subr.bf16.mxu0 %v2244_v1 }
  0xd8   :  { %v92_v11 = vpop.f32.mrb[0].mxu0 }
  0xd9   :  { %v1899_v12 = vpop.f32.mrb[1].mxu0  ;;  %v2320_v13 = vadd.f32 %v92_v11, %v42_v10 }
  0xda   :  { %v95_v14 = vpop.f32.mrb[2].mxu0 }
  0xdb   :  { %v2322_v15 = vadd.f32 %v95_v14, %v42_v10  ;;  %v1900_v16 = vpop.f32.mrb[3].mxu0 }
  0xdd   :  { %v149_v17 = vpop.f32.mrb[0].mxu1 }
  0xde   :  { %v155_v18 = vadd.f32 %v149_v17, %v2320_v13  ;;  %v1907_v19 = vpop.f32.mrb[1].mxu1 }
  0xdf   :  { %v152_v20 = vpop.f32.mrb[2].mxu1 }
  0xe0   :  { %v1757_v21 = vmul.f32 -1.442695, %v155_v18  ;;  %v1908_v22 = vpop.f32.mrb[3].mxu1 }
  0xe2   :  { %2117 = vpow2.f32 %v1757_v21 }
  0xe5   :  { %v228_v41 = vpop.f32.mrb[4].mxu0 }
  0xe6   :  { %v1915_v42 = vpop.f32.mrb[5].mxu0 }
  0xe7   :  { %v231_v43 = vpop.f32.mrb[6].mxu0 }
  0xe8   :  { %v1916_v44 = vpop.f32.mrb[7].mxu0 }
  0xec   :  { %v2118_v23 = vpop.eup %2117 }
  0xed   :  { %v159_v24 = vadd.f32 1.0, %v2118_v23 }
  0xef   :  { %2119 = vrcp.f32 %v159_v24 }
  0xf9   :  { %v2120_v25 = vpop.eup %2119 }
  0xfa   :  { %v162_v26 = vmul.f32 2.0, %v2120_v25  ;;  %v164_v30 = vmul.f32 0.0, %v2120_v25 }
  0xfc   :  { %v1758_v27 = vadd.f32 -1.0, %v162_v26 }
  0xfe   :  { %166 = vrot.lane.b32.xlu0 %v1758_v27, %s2247_s27 }
 0x170   :  { %v167_v28 = vpop.permute.xlu0 %166 }
 0x171   :  { %v169_v29 = vmul.f32 %v2120_v25, %v167_v28 }
 0x173   :  { %171 = vrot.lane.b32.xlu0 %v169_v29, %s2248_s28 }
 0x1e5   :  { %v172_v31 = vpop.permute.xlu0 %171 }
 0x1e6   :  { %v2327_v32 = vadd.f32 %v172_v31, %v164_v30 }
 0x1e8   :  { %2121 = vtanh.f32 %v2327_v32  ;;  %v375_v18 = vrot.slane %v2327_v32, 6 }
 0x1f2   :  { %v2122_v37 = vpop.eup %2121 }
 0x1f3   :  { %177 = vrot.lane.b32.xlu1 %v2122_v37, %s2247_s27 }
 0x265   :  { %v178_v38 = vpop.permute.xlu1 %177 }
 0x266   :  { %v180_v39 = vmul.f32 %v2120_v25, %v178_v38 }
 0x268   :  { %v181_v40 = vpack.c.bf16 %v180_v39, %v180_v39 }
 0x26a   :  { %235 = vrot.lane.b32.xlu1 %v181_v40, %s2248_s28 }
 0x2dc   :  { %v236_v45 = vpop.permute.xlu1 %235 }
 0x2dd   :  { %1922 = vmatmul.mubr.msk.bf16.vlgmr.msra.gmra.mrb[4].mxu1 %vm111_vm2, %v236_v45  ;;  %1930 = vmatmul.mubr.msk.bf16.vlgmr.msra.gmra.mrb[8].mxu0 %vm111_vm2, %v236_v45 }
 0x2de   :  { %1934 = vmatpush3.bf16.msra.mxu1 %v2333_v33  ;;  %1942 = vmatpush3.bf16.msra.mxu0 %v2338_v34 }
 0x2df   :  { %1935 = vmatprep.subr.bf16.mxu1 %v2244_v1  ;;  %1943 = vmatprep.subr.bf16.mxu0 %v2244_v1 }
 0x2e0   :  { %1937 = vmatprep.mubr.msk.bf16.mxu1 %vm2245_vm0, %v2244_v1  ;;  %1945 = vmatprep.mubr.msk.bf16.mxu0 %vm2245_vm0, %v2244_v1 }
 0x2e2   :  { %1936 = vmatpush3.bf16.msra.mxu1 %v2344_v35  ;;  %1944 = vmatpush3.bf16.msra.mxu0 %v2350_v36 }
 0x2e3   :  { %1949 = vmatprep.subr.bf16.mxu1 %v2244_v1  ;;  %1957 = vmatprep.subr.bf16.mxu0 %v2244_v1 }
 0x3b0   :  { %v286_v48 = vpop.f32.mrb[4].mxu1  ;;  %v356_v49 = vpop.f32.mrb[8].mxu0 }
 0x3b1   :  { %v287_v50 = vadd.f32 %v286_v48, %v228_v41  ;;  %v363_v51 = vrot.slane %v356_v49, 6  ;;  %v1923_v52 = vpop.f32.mrb[5].mxu1  ;;  %v1931_v53 = vpop.f32.mrb[9].mxu0 }
 0x3b2   :  { %v289_v54 = vpop.f32.mrb[6].mxu1  ;;  %v359_v55 = vpop.f32.mrb[10].mxu0 }
 0x3b3   :  { %v296_v56 = vadd.f32 %v2382_v47, %v287_v50  ;;  %v365_v57 = vadd.f32 %v363_v51, %v2320_v13  ;;  %v1924_v58 = vpop.f32.mrb[7].mxu1  ;;  %v1932_v59 = vpop.f32.mrb[11].mxu0 }
 0x3b5   :  { %v1764_v60 = vmul.f32 -1.442695, %v296_v56  ;;  %v1767_v61 = vmul.f32 -1.442695, %v365_v57 }
 0x3b7   :  { %2123 = vpow2.f32 %v1764_v60 }
 0x3b8   :  { %2125 = vpow2.f32 %v1767_v61 }
 0x3c1   :  { %v2124_v62 = vpop.eup %2123 }
 0x3c2   :  { %v2126_v63 = vpop.eup %2125  ;;  %v300_v0 = vadd.f32 1.0, %v2124_v62 }
 0x3c3   :  { %v369_v3 = vadd.f32 1.0, %v2126_v63 }
 0x3c4   :  { %2127 = vrcp.f32 %v300_v0 }
 0x3c5   :  { %2129 = vrcp.f32 %v369_v3 }
 0x3ce   :  { %v2128_v5 = vpop.eup %2127 }
 0x3cf   :  { %v2130_v6 = vpop.eup %2129  ;;  %v303_v8 = vmul.f32 2.0, %v2128_v5  ;;  %v305_v19 = vmul.f32 0.0, %v2128_v5 }
 0x3d0   :  { %v372_v9 = vmul.f32 2.0, %v2130_v6  ;;  %v377_v21 = vmul.f32 %v2130_v6, %v375_v18 }
 0x3d1   :  { %v1765_v10 = vadd.f32 -1.0, %v303_v8 }
 0x3d2   :  { %v1768_v11 = vadd.f32 -1.0, %v372_v9 }
 0x3d3   :  { %307 = vrot.lane.b32.xlu0 %v1765_v10, %s2247_s27 }
 0x3d4   :  { %379 = vrot.lane.b32.xlu1 %v1768_v11, %s2247_s27 }
 0x445   :  { %v308_v12 = vpop.permute.xlu0 %307 }
 0x446   :  { %v310_v14 = vmul.f32 %v2128_v5, %v308_v12  ;;  %v380_v16 = vpop.permute.xlu1 %379 }
 0x447   :  { %v382_v17 = vmul.f32 %v2130_v6, %v380_v16 }
 0x448   :  { %312 = vrot.lane.b32.xlu0 %v310_v14, %s2248_s28 }
 0x449   :  { %384 = vrot.lane.b32.xlu1 %v382_v17, %s2248_s28 }
 0x4ba   :  { %v313_v20 = vpop.permute.xlu0 %312 }
 0x4bb   :  { %v2391_v22 = vadd.f32 %v313_v20, %v305_v19  ;;  %v385_v23 = vpop.permute.xlu1 %384 }
 0x4bc   :  { %v2393_v24 = vadd.f32 %v385_v23, %v377_v21 }
 0x4bd   :  { %2131 = vtanh.f32 %v2391_v22 }
 0x4be   :  { %2133 = vtanh.f32 %v2393_v24  ;;  %v568_v18 = vrot.slane %v2393_v24, 6 }
 0x4c7   :  { %v2132_v25 = vpop.eup %2131 }
 0x4c8   :  { %v2134_v26 = vpop.eup %2133  ;;  %318 = vrot.lane.b32.xlu0 %v2132_v25, %s2247_s27 }
 0x4c9   :  { %390 = vrot.lane.b32.xlu1 %v2134_v26, %s2247_s27 }
 0x53a   :  { %v319_v27 = vpop.permute.xlu0 %318 }
 0x53b   :  { %v321_v28 = vmul.f32 %v2128_v5, %v319_v27  ;;  %v391_v29 = vpop.permute.xlu1 %390 }
 0x53c   :  { %v393_v30 = vmul.f32 %v2130_v6, %v391_v29 }
 0x53d   :  { %v395_v31 = vpack.c.bf16 %v321_v28, %v321_v28 }
 0x53e   :  { %v394_v32 = vpack.c.bf16 %v393_v30, %v393_v30 }
 0x53f   :  { %397 = vrot.lane.b32.xlu0 %v395_v31, %s2248_s28 }
 0x540   :  { %v443_v37 = vrot.slane %v394_v32, 1 }
 0x542   :  { %444 = vrot.lane.b32.xlu1 %v443_v37, %s2248_s28 }
 0x5b1   :  { %v398_v38 = vpop.permute.xlu0 %397 }
 0x5b2   :  { %1938 = vmatmul.mubr.msk.bf16.vlgmr.msra.gmra.mrb[8].mxu1 %vm111_vm2, %v398_v38 }
 0x5b3   :  { %1950 = vmatpush3.bf16.msra.mxu1 %v2288_v2  ;;  %1953 = vmatprep.mubr.msk.bf16.mxu1 %vm2245_vm0, %v2244_v1 }
 0x5b4   :  { %v445_v39 = vpop.permute.xlu1 %444  ;;  %1951 = vmatprep.subr.bf16.mxu1 %v2244_v1 }
 0x5b5   :  { %1946 = vmatmul.mubr.msk.bf16.vlgmr.msra.gmra.mrb[12].mxu0 %vm111_vm2, %v445_v39 }
 0x5b6   :  { %1958 = vmatpush3.bf16.msra.mxu0 %v2333_v33  ;;  %1961 = vmatprep.mubr.msk.bf16.mxu0 %vm2245_vm0, %v2244_v1 }
 0x5b7   :  { %1952 = vmatpush3.bf16.msra.mxu1 %v2299_v4  ;;  %1959 = vmatprep.subr.bf16.mxu0 %v2244_v1 }
 0x5b8   :  { %1965 = vmatprep.subr.bf16.mxu1 %v2244_v1 }
 0x5ba   :  { %1954 = vmatmul.mubr.msk.bf16.vlgmr.msra.gmra.mrb[12].mxu1 %vm111_vm2, %v445_v39  ;;  %1960 = vmatpush3.bf16.msra.mxu0 %v2344_v35 }
 0x5bb   :  { %1973 = vmatprep.subr.bf16.mxu0 %v2244_v1  ;;  %1966 = vmatpush3.bf16.msra.mxu1 %v2338_v34 }
 0x5bc   :  { %1967 = vmatprep.subr.bf16.mxu1 %v2244_v1  ;;  %1969 = vmatprep.mubr.msk.bf16.mxu1 %vm2245_vm0, %v2244_v1 }
 0x5bf   :  { %1968 = vmatpush3.bf16.msra.mxu1 %v2350_v36 }
 0x5c0   :  { %1981 = vmatprep.subr.bf16.mxu1 %v2244_v1 }
 0x685   :  { %v436_v40 = vpop.f32.mrb[8].mxu1 }
 0x686   :  { %v1939_v41 = vpop.f32.mrb[9].mxu1 }
 0x687   :  { %v439_v42 = vpop.f32.mrb[10].mxu1 }
 0x688   :  { %v483_v43 = vpop.f32.mrb[12].mxu0  ;;  %v1940_v44 = vpop.f32.mrb[11].mxu1 }
 0x689   :  { %v484_v45 = vadd.f32 %v483_v43, %v436_v40  ;;  %v1947_v46 = vpop.f32.mrb[13].mxu0 }
 0x68a   :  { %v486_v48 = vpop.f32.mrb[14].mxu0 }
 0x68b   :  { %v489_v49 = vadd.f32 %v484_v45, %v2382_v47  ;;  %v1948_v50 = vpop.f32.mrb[15].mxu0 }
 0x68d   :  { %v1771_v51 = vmul.f32 -1.442695, %v489_v49  ;;  %v549_v52 = vpop.f32.mrb[12].mxu1 }
 0x68e   :  { %v556_v53 = vrot.slane %v549_v52, 4  ;;  %v1955_v54 = vpop.f32.mrb[13].mxu1 }
 0x68f   :  { %2135 = vpow2.f32 %v1771_v51  ;;  %v552_v55 = vpop.f32.mrb[14].mxu1 }
 0x690   :  { %v558_v56 = vadd.f32 %v556_v53, %v2320_v13  ;;  %v1956_v57 = vpop.f32.mrb[15].mxu1 }
 0x692   :  { %v1774_v58 = vmul.f32 -1.442695, %v558_v56 }
 0x694   :  { %2137 = vpow2.f32 %v1774_v58 }
 0x699   :  { %v2136_v59 = vpop.eup %2135 }
 0x69a   :  { %v493_v60 = vadd.f32 1.0, %v2136_v59 }
 0x69c   :  { %2139 = vrcp.f32 %v493_v60 }
 0x69e   :  { %v2138_v61 = vpop.eup %2137 }
 0x69f   :  { %v562_v62 = vadd.f32 1.0, %v2138_v61 }
 0x6a1   :  { %2141 = vrcp.f32 %v562_v62 }
 0x6a6   :  { %v2140_v63 = vpop.eup %2139 }
 0x6a7   :  { %v496_v0 = vmul.f32 2.0, %v2140_v63  ;;  %v498_v14 = vmul.f32 %v2140_v63, %v2391_v22 }
 0x6a9   :  { %v1772_v3 = vadd.f32 -1.0, %v496_v0 }
 0x6ab   :  { %v2142_v5 = vpop.eup %2141  ;;  %500 = vrot.lane.b32.xlu0 %v1772_v3, %s2247_s27 }
 0x6ac   :  { %v565_v6 = vmul.f32 2.0, %v2142_v5  ;;  %v570_v19 = vmul.f32 %v2142_v5, %v568_v18 }
 0x6ae   :  { %v1775_v8 = vadd.f32 -1.0, %v565_v6 }
 0x6b0   :  { %572 = vrot.lane.b32.xlu1 %v1775_v8, %s2247_s27 }
 0x71d   :  { %v501_v9 = vpop.permute.xlu0 %500 }
 0x71e   :  { %v503_v10 = vmul.f32 %v2140_v63, %v501_v9 }
 0x720   :  { %505 = vrot.lane.b32.xlu0 %v503_v10, %s2248_s28 }
 0x722   :  { %v573_v11 = vpop.permute.xlu1 %572 }
 0x723   :  { %v575_v12 = vmul.f32 %v2142_v5, %v573_v11 }
 0x725   :  { %577 = vrot.lane.b32.xlu1 %v575_v12, %s2248_s28 }
 0x792   :  { %v506_v16 = vpop.permute.xlu0 %505 }
 0x793   :  { %v2429_v17 = vadd.f32 %v506_v16, %v498_v14 }
 0x795   :  { %2143 = vtanh.f32 %v2429_v17 }
 0x797   :  { %v578_v20 = vpop.permute.xlu1 %577 }
 0x798   :  { %v2433_v21 = vadd.f32 %v578_v20, %v570_v19 }
 0x79a   :  { %2145 = vtanh.f32 %v2433_v21  ;;  %v761_v9 = vrot.slane %v2433_v21, 6 }
 0x79f   :  { %v2144_v23 = vpop.eup %2143 }
 0x7a0   :  { %511 = vrot.lane.b32.xlu0 %v2144_v23, %s2247_s27 }
 0x7a4   :  { %v2146_v25 = vpop.eup %2145 }
 0x7a5   :  { %583 = vrot.lane.b32.xlu1 %v2146_v25, %s2247_s27 }
 0x812   :  { %v512_v22 = vpop.permute.xlu0 %511 }
 0x813   :  { %v514_v26 = vmul.f32 %v2140_v63, %v512_v22 }
 0x815   :  { %v588_v27 = vpack.c.bf16 %v514_v26, %v514_v26 }
 0x817   :  { %590 = vrot.lane.b32.xlu0 %v588_v27, %s2248_s28  ;;  %v584_v24 = vpop.permute.xlu1 %583 }
 0x818   :  { %v586_v28 = vmul.f32 %v2142_v5, %v584_v24 }
 0x81a   :  { %v587_v29 = vpack.c.bf16 %v586_v28, %v586_v28 }
 0x81c   :  { %v636_v30 = vrot.slane %v587_v29, 2 }
 0x81e   :  { %637 = vrot.lane.b32.xlu1 %v636_v30, %s2248_s28 }
 0x889   :  { %v591_v31 = vpop.permute.xlu0 %590 }
 0x88a   :  { %1962 = vmatmul.mubr.msk.bf16.vlgmr.msra.gmra.mrb[16].mxu0 %vm111_vm2, %v591_v31 }
 0x88b   :  { %1974 = vmatpush3.bf16.msra.mxu0 %v2288_v2  ;;  %1977 = vmatprep.mubr.msk.bf16.mxu0 %vm2245_vm0, %v2244_v1 }
 0x88c   :  { %1975 = vmatprep.subr.bf16.mxu0 %v2244_v1 }
 0x88f   :  { %1976 = vmatpush3.bf16.msra.mxu0 %v2299_v4 }
 0x890   :  { %v638_v32 = vpop.permute.xlu1 %637  ;;  %1989 = vmatprep.subr.bf16.mxu0 %v2244_v1 }
 0x891   :  { %1970 = vmatmul.mubr.msk.bf16.vlgmr.msra.gmra.mrb[16].mxu1 %vm111_vm2, %v638_v32 }
 0x892   :  { %1978 = vmatmul.mubr.msk.bf16.vlgmr.msra.gmra.mrb[20].mxu0 %vm111_vm2, %v638_v32  ;;  %1982 = vmatpush3.bf16.msra.mxu1 %v2333_v33 }
 0x893   :  { %1990 = vmatpush3.bf16.msra.mxu0 %v2338_v34  ;;  %1983 = vmatprep.subr.bf16.mxu1 %v2244_v1 }
 0x894   :  { %1991 = vmatprep.subr.bf16.mxu0 %v2244_v1  ;;  %1985 = vmatprep.mubr.msk.bf16.mxu1 %vm2245_vm0, %v2244_v1 }
 0x895   :  { %1993 = vmatprep.mubr.msk.bf16.mxu0 %vm2245_vm0, %v2244_v1 }
 0x896   :  { %1984 = vmatpush3.bf16.msra.mxu1 %v2344_v35 }
 0x897   :  { %1992 = vmatpush3.bf16.msra.mxu0 %v2350_v36  ;;  %1997 = vmatprep.subr.bf16.mxu1 %v2244_v1 }
 0x898   :  { %2005 = vmatprep.subr.bf16.mxu0 %v2244_v1 }
 0x95d   :  { %v629_v37 = vpop.f32.mrb[16].mxu0 }
 0x95e   :  { %v1963_v38 = vpop.f32.mrb[17].mxu0 }
 0x95f   :  { %v632_v39 = vpop.f32.mrb[18].mxu0 }
 0x960   :  { %v1964_v40 = vpop.f32.mrb[19].mxu0 }
 0x964   :  { %v676_v41 = vpop.f32.mrb[16].mxu1 }
 0x965   :  { %v677_v42 = vadd.f32 %v676_v41, %v629_v37  ;;  %v742_v43 = vpop.f32.mrb[20].mxu0  ;;  %v1971_v44 = vpop.f32.mrb[17].mxu1 }
 0x966   :  { %v749_v45 = vrot.slane %v742_v43, 2  ;;  %v1979_v46 = vpop.f32.mrb[21].mxu0  ;;  %v679_v48 = vpop.f32.mrb[18].mxu1 }
 0x967   :  { %v682_v49 = vadd.f32 %v677_v42, %v2382_v47  ;;  %v745_v50 = vpop.f32.mrb[22].mxu0  ;;  %v1972_v51 = vpop.f32.mrb[19].mxu1 }
 0x968   :  { %v751_v52 = vadd.f32 %v749_v45, %v2320_v13  ;;  %v1980_v53 = vpop.f32.mrb[23].mxu0 }
 0x969   :  { %v1778_v54 = vmul.f32 -1.442695, %v682_v49 }
 0x96a   :  { %v1781_v55 = vmul.f32 -1.442695, %v751_v52 }
 0x96b   :  { %2147 = vpow2.f32 %v1778_v54 }
 0x96c   :  { %2149 = vpow2.f32 %v1781_v55 }
 0x975   :  { %v2148_v56 = vpop.eup %2147 }
 0x976   :  { %v2150_v57 = vpop.eup %2149  ;;  %v686_v58 = vadd.f32 1.0, %v2148_v56 }
 0x977   :  { %v755_v59 = vadd.f32 1.0, %v2150_v57 }
 0x978   :  { %2151 = vrcp.f32 %v686_v58 }
 0x979   :  { %2153 = vrcp.f32 %v755_v59 }
 0x982   :  { %v2152_v60 = vpop.eup %2151 }
 0x983   :  { %v2154_v61 = vpop.eup %2153  ;;  %v689_v62 = vmul.f32 2.0, %v2152_v60  ;;  %v691_v10 = vmul.f32 %v2152_v60, %v2429_v17 }
 0x984   :  { %v758_v63 = vmul.f32 2.0, %v2154_v61  ;;  %v763_v12 = vmul.f32 %v2154_v61, %v761_v9 }
 0x985   :  { %v1779_v0 = vadd.f32 -1.0, %v689_v62 }
 0x986   :  { %v1782_v3 = vadd.f32 -1.0, %v758_v63 }
 0x987   :  { %693 = vrot.lane.b32.xlu1 %v1779_v0, %s2247_s27 }
 0x988   :  { %765 = vrot.lane.b32.xlu0 %v1782_v3, %s2247_s27 }
 0x9f9   :  { %v694_v13 = vpop.permute.xlu1 %693 }
 0x9fa   :  { %v696_v5 = vmul.f32 %v2152_v60, %v694_v13  ;;  %v766_v6 = vpop.permute.xlu0 %765 }
 0x9fb   :  { %v768_v8 = vmul.f32 %v2154_v61, %v766_v6 }
 0x9fc   :  { %698 = vrot.lane.b32.xlu1 %v696_v5, %s2248_s28 }
 0x9fd   :  { %770 = vrot.lane.b32.xlu0 %v768_v8, %s2248_s28 }
 0xa6e   :  { %v699_v11 = vpop.permute.xlu1 %698 }
 0xa6f   :  { %v2469_v14 = vadd.f32 %v699_v11, %v691_v10  ;;  %v771_v16 = vpop.permute.xlu0 %770 }
 0xa70   :  { %v2471_v18 = vadd.f32 %v771_v16, %v763_v12 }
 0xa71   :  { %2155 = vtanh.f32 %v2469_v14 }
 0xa72   :  { %2157 = vtanh.f32 %v2471_v18  ;;  %v951_v13 = vrot.slane %v2471_v18, 6 }
 0xa7b   :  { %v2156_v19 = vpop.eup %2155 }
 0xa7c   :  { %v2158_v20 = vpop.eup %2157  ;;  %704 = vrot.lane.b32.xlu1 %v2156_v19, %s2247_s27 }
 0xa7d   :  { %776 = vrot.lane.b32.xlu0 %v2158_v20, %s2247_s27 }
 0xaee   :  { %v705_v21 = vpop.permute.xlu1 %704 }
 0xaef   :  { %v707_v23 = vmul.f32 %v2152_v60, %v705_v21  ;;  %v777_v17 = vpop.permute.xlu0 %776 }
 0xaf0   :  { %v779_v25 = vmul.f32 %v2154_v61, %v777_v17 }
 0xaf1   :  { %v781_v22 = vpack.c.bf16 %v707_v23, %v707_v23 }
 0xaf2   :  { %v780_v26 = vpack.c.bf16 %v779_v25, %v779_v25 }
 0xaf3   :  { %783 = vrot.lane.b32.xlu0 %v781_v22, %s2248_s28 }
 0xaf4   :  { %v829_v27 = vrot.slane %v780_v26, 3 }
 0xaf6   :  { %830 = vrot.lane.b32.xlu1 %v829_v27, %s2248_s28 }
 0xb65   :  { %v784_v24 = vpop.permute.xlu0 %783 }
 0xb66   :  { %1986 = vmatmul.mubr.msk.bf16.vlgmr.msra.gmra.mrb[20].mxu1 %vm111_vm2, %v784_v24 }
 0xb67   :  { %1998 = vmatpush3.bf16.msra.mxu1 %v2288_v2  ;;  %2001 = vmatprep.mubr.msk.bf16.mxu1 %vm2245_vm0, %v2244_v1 }
 0xb68   :  { %v831_v28 = vpop.permute.xlu1 %830  ;;  %1999 = vmatprep.subr.bf16.mxu1 %v2244_v1 }
 0xb69   :  { %1994 = vmatmul.mubr.msk.bf16.vlgmr.msra.gmra.mrb[24].mxu0 %vm111_vm2, %v831_v28 }
 0xb6a   :  { %2006 = vmatpush3.bf16.msra.mxu0 %v2333_v33  ;;  %2009 = vmatprep.mubr.msk.bf16.mxu0 %vm2245_vm0, %v2244_v1 }
 0xb6b   :  { %2000 = vmatpush3.bf16.msra.mxu1 %v2299_v4  ;;  %2007 = vmatprep.subr.bf16.mxu0 %v2244_v1 }
 0xb6c   :  { %2013 = vmatprep.subr.bf16.mxu1 %v2244_v1 }
 0xb6e   :  { %2002 = vmatmul.mubr.msk.bf16.vlgmr.msra.gmra.mrb[24].mxu1 %vm111_vm2, %v831_v28  ;;  %2008 = vmatpush3.bf16.msra.mxu0 %v2344_v35 }
 0xb6f   :  { %2014 = vmatpush3.bf16.msra.mxu1 %v2338_v34  ;;  %2021 = vmatprep.subr.bf16.mxu0 %v2244_v1 }
 0xb70   :  { %2015 = vmatprep.subr.bf16.mxu1 %v2244_v1  ;;  %2017 = vmatprep.mubr.msk.bf16.mxu1 %vm2245_vm0, %v2244_v1 }
 0xb73   :  { %2016 = vmatpush3.bf16.msra.mxu1 %v2350_v36 }
 0xb74   :  { %2029 = vmatprep.subr.bf16.mxu1 %v2244_v1 }
 0xc39   :  { %v822_v29 = vpop.f32.mrb[20].mxu1 }
 0xc3a   :  { %v1987_v30 = vpop.f32.mrb[21].mxu1 }
 0xc3b   :  { %v825_v31 = vpop.f32.mrb[22].mxu1 }
 0xc3c   :  { %v869_v32 = vpop.f32.mrb[24].mxu0  ;;  %v1988_v37 = vpop.f32.mrb[23].mxu1 }
 0xc3d   :  { %v870_v38 = vadd.f32 %v869_v32, %v822_v29  ;;  %v1995_v39 = vpop.f32.mrb[25].mxu0 }
 0xc3e   :  { %v872_v40 = vpop.f32.mrb[26].mxu0 }
 0xc3f   :  { %v875_v41 = vadd.f32 %v870_v38, %v2382_v47  ;;  %v1996_v42 = vpop.f32.mrb[27].mxu0 }
 0xc41   :  { %v1785_v43 = vmul.f32 -1.442695, %v875_v41  ;;  %v935_v44 = vpop.f32.mrb[24].mxu1 }
 0xc42   :  { %v941_v45 = vadd.f32 %v935_v44, %v2322_v15  ;;  %v2003_v46 = vpop.f32.mrb[25].mxu1 }
 0xc43   :  { %2159 = vpow2.f32 %v1785_v43  ;;  %v938_v48 = vpop.f32.mrb[26].mxu1 }
 0xc44   :  { %v1788_v49 = vmul.f32 -1.442695, %v941_v45  ;;  %v2004_v50 = vpop.f32.mrb[27].mxu1 }
 0xc46   :  { %2161 = vpow2.f32 %v1788_v49 }
 0xc4d   :  { %v2160_v51 = vpop.eup %2159 }
 0xc4e   :  { %v879_v52 = vadd.f32 1.0, %v2160_v51 }
 0xc50   :  { %v2162_v53 = vpop.eup %2161  ;;  %2163 = vrcp.f32 %v879_v52 }
 0xc51   :  { %v945_v54 = vadd.f32 1.0, %v2162_v53 }
 0xc53   :  { %2165 = vrcp.f32 %v945_v54 }
 0xc5a   :  { %v2164_v55 = vpop.eup %2163 }
 0xc5b   :  { %v882_v56 = vmul.f32 2.0, %v2164_v55  ;;  %v884_v3 = vmul.f32 %v2164_v55, %v2469_v14 }
 0xc5d   :  { %v2166_v57 = vpop.eup %2165  ;;  %v1786_v58 = vadd.f32 -1.0, %v882_v56 }
 0xc5e   :  { %v948_v59 = vmul.f32 2.0, %v2166_v57  ;;  %v953_v8 = vmul.f32 %v2166_v57, %v951_v13 }
 0xc5f   :  { %886 = vrot.lane.b32.xlu0 %v1786_v58, %s2247_s27 }
 0xc60   :  { %v1789_v60 = vadd.f32 -1.0, %v948_v59 }
 0xc62   :  { %955 = vrot.lane.b32.xlu1 %v1789_v60, %s2247_s27 }
 0xcd1   :  { %v887_v61 = vpop.permute.xlu0 %886 }
 0xcd2   :  { %v889_v62 = vmul.f32 %v2164_v55, %v887_v61 }
 0xcd4   :  { %891 = vrot.lane.b32.xlu0 %v889_v62, %s2248_s28  ;;  %v956_v63 = vpop.permute.xlu1 %955 }
 0xcd5   :  { %v958_v0 = vmul.f32 %v2166_v57, %v956_v63 }
 0xcd7   :  { %960 = vrot.lane.b32.xlu1 %v958_v0, %s2248_s28 }
 0xd46   :  { %v892_v5 = vpop.permute.xlu0 %891 }
 0xd47   :  { %v2508_v6 = vadd.f32 %v892_v5, %v884_v3 }
 0xd49   :  { %2167 = vtanh.f32 %v2508_v6  ;;  %v961_v9 = vpop.permute.xlu1 %960 }
 0xd4a   :  { %v2511_v10 = vadd.f32 %v961_v9, %v953_v8 }
 0xd4c   :  { %2169 = vtanh.f32 %v2511_v10  ;;  %v1143_v63 = vrot.slane %v2511_v10, 6 }
 0xd53   :  { %v2168_v11 = vpop.eup %2167 }
 0xd54   :  { %897 = vrot.lane.b32.xlu0 %v2168_v11, %s2247_s27 }
 0xd56   :  { %v2170_v12 = vpop.eup %2169 }
 0xd57   :  { %966 = vrot.lane.b32.xlu1 %v2170_v12, %s2247_s27 }
 0xdc6   :  { %v898_v14 = vpop.permute.xlu0 %897 }
 0xdc7   :  { %v900_v16 = vmul.f32 %v2164_v55, %v898_v14 }
 0xdc9   :  { %v971_v18 = vpack.c.bf16 %v900_v16, %v900_v16  ;;  %v967_v19 = vpop.permute.xlu1 %966 }
 0xdca   :  { %v969_v20 = vmul.f32 %v2166_v57, %v967_v19 }
 0xdcb   :  { %973 = vrot.lane.b32.xlu0 %v971_v18, %s2248_s28 }
 0xdcc   :  { %v970_v21 = vpack.c.bf16 %v969_v20, %v969_v20 }
 0xdce   :  { %1019 = vrot.lane.b32.xlu1 %v970_v21, %s2248_s28 }
 0xe3d   :  { %v974_v23 = vpop.permute.xlu0 %973 }
 0xe3e   :  { %2010 = vmatmul.mubr.msk.bf16.vlgmr.msra.gmra.mrb[28].mxu0 %vm111_vm2, %v974_v23 }
 0xe3f   :  { %2022 = vmatpush3.bf16.msra.mxu0 %v2288_v2  ;;  %2025 = vmatprep.mubr.msk.bf16.mxu0 %vm2245_vm0, %v2244_v1 }
 0xe40   :  { %v1020_v17 = vpop.permute.xlu1 %1019  ;;  %2023 = vmatprep.subr.bf16.mxu0 %v2244_v1 }
 0xe41   :  { %2018 = vmatmul.mubr.msk.bf16.vlgmr.msra.gmra.mrb[28].mxu1 %vm111_vm2, %v1020_v17 }
 0xe42   :  { %2030 = vmatpush3.bf16.msra.mxu1 %v2333_v33  ;;  %2033 = vmatprep.mubr.msk.bf16.mxu1 %vm2245_vm0, %v2244_v1 }
 0xe43   :  { %2024 = vmatpush3.bf16.msra.mxu0 %v2299_v4  ;;  %2031 = vmatprep.subr.bf16.mxu1 %v2244_v1 }
 0xe44   :  { %2037 = vmatprep.subr.bf16.mxu0 %v2244_v1 }
 0xe46   :  { %2026 = vmatmul.mubr.msk.bf16.vlgmr.msra.gmra.mrb[32].mxu0 %vm111_vm2, %v1020_v17  ;;  %2032 = vmatpush3.bf16.msra.mxu1 %v2344_v35 }
 0xe47   :  { %2038 = vmatpush3.bf16.msra.mxu0 %v2338_v34  ;;  %2045 = vmatprep.subr.bf16.mxu1 %v2244_v1 }
 0xe48   :  { %2039 = vmatprep.subr.bf16.mxu0 %v2244_v1  ;;  %2041 = vmatprep.mubr.msk.bf16.mxu0 %vm2245_vm0, %v2244_v1 }
 0xe4b   :  { %2040 = vmatpush3.bf16.msra.mxu0 %v2350_v36 }
 0xe4c   :  { %2053 = vmatprep.subr.bf16.mxu0 %v2244_v1 }
 0xf11   :  { %v1012_v25 = vpop.f32.mrb[28].mxu0 }
 0xf12   :  { %v2011_v22 = vpop.f32.mrb[29].mxu0 }
 0xf13   :  { %v1015_v26 = vpop.f32.mrb[30].mxu0 }
 0xf14   :  { %v2012_v27 = vpop.f32.mrb[31].mxu0  ;;  %v1058_v24 = vpop.f32.mrb[28].mxu1 }
 0xf15   :  { %v1059_v28 = vadd.f32 %v1058_v24, %v1012_v25  ;;  %v2019_v29 = vpop.f32.mrb[29].mxu1 }
 0xf16   :  { %v1061_v30 = vpop.f32.mrb[30].mxu1 }
 0xf17   :  { %v1064_v31 = vadd.f32 %v1059_v28, %v2382_v47  ;;  %v2020_v32 = vpop.f32.mrb[31].mxu1 }
 0xf19   :  { %v1792_v37 = vmul.f32 -1.442695, %v1064_v31  ;;  %v1124_v38 = vpop.f32.mrb[32].mxu0 }
 0xf1a   :  { %v1131_v39 = vrot.slane %v1124_v38, 6  ;;  %v2027_v40 = vpop.f32.mrb[33].mxu0 }
 0xf1b   :  { %2171 = vpow2.f32 %v1792_v37  ;;  %v1127_v41 = vpop.f32.mrb[34].mxu0 }
 0xf1c   :  { %v1133_v42 = vadd.f32 %v1131_v39, %v2322_v15  ;;  %v2028_v43 = vpop.f32.mrb[35].mxu0 }
 0xf1e   :  { %v1795_v44 = vmul.f32 -1.442695, %v1133_v42 }
 0xf20   :  { %2173 = vpow2.f32 %v1795_v44 }
 0xf25   :  { %v2172_v45 = vpop.eup %2171 }
 0xf26   :  { %v1068_v46 = vadd.f32 1.0, %v2172_v45 }
 0xf28   :  { %2175 = vrcp.f32 %v1068_v46 }
 0xf2a   :  { %v2174_v48 = vpop.eup %2173 }
 0xf2b   :  { %v1137_v49 = vadd.f32 1.0, %v2174_v48 }
 0xf2d   :  { %2177 = vrcp.f32 %v1137_v49 }
 0xf32   :  { %v2176_v50 = vpop.eup %2175 }
 0xf33   :  { %v1071_v51 = vmul.f32 2.0, %v2176_v50  ;;  %v1073_v60 = vmul.f32 %v2176_v50, %v2508_v6 }
 0xf35   :  { %v1793_v52 = vadd.f32 -1.0, %v1071_v51 }
 0xf37   :  { %v2178_v53 = vpop.eup %2177  ;;  %1075 = vrot.lane.b32.xlu0 %v1793_v52, %s2247_s27 }
 0xf38   :  { %v1140_v54 = vmul.f32 2.0, %v2178_v53  ;;  %v1145_v0 = vmul.f32 %v2178_v53, %v1143_v63 }
 0xf3a   :  { %v1796_v55 = vadd.f32 -1.0, %v1140_v54 }
 0xf3c   :  { %1147 = vrot.lane.b32.xlu1 %v1796_v55, %s2247_s27 }
 0xfa9   :  { %v1076_v56 = vpop.permute.xlu0 %1075 }
 0xfaa   :  { %v1078_v57 = vmul.f32 %v2176_v50, %v1076_v56 }
 0xfac   :  { %1080 = vrot.lane.b32.xlu0 %v1078_v57, %s2248_s28 }
 0xfae   :  { %v1148_v58 = vpop.permute.xlu1 %1147 }
 0xfaf   :  { %v1150_v59 = vmul.f32 %v2178_v53, %v1148_v58 }
 0xfb1   :  { %1152 = vrot.lane.b32.xlu1 %v1150_v59, %s2248_s28 }
0x101e   :  { %v1081_v61 = vpop.permute.xlu0 %1080 }
0x101f   :  { %v2546_v62 = vadd.f32 %v1081_v61, %v1073_v60 }
0x1021   :  { %2179 = vtanh.f32 %v2546_v62 }
0x1023   :  { %v1153_v3 = vpop.permute.xlu1 %1152 }
0x1024   :  { %v2550_v13 = vadd.f32 %v1153_v3, %v1145_v0 }
0x1026   :  { %2181 = vtanh.f32 %v2550_v13 }
0x102b   :  { %v2180_v5 = vpop.eup %2179 }
0x102c   :  { %1086 = vrot.lane.b32.xlu0 %v2180_v5, %s2247_s27  ;;  %v2213_v5 = vld [vmem:[%s2674_s1 + $0x8] sm:$0xff]  }
0x1030   :  { %v2182_v8 = vpop.eup %2181 }
0x1031   :  { %1158 = vrot.lane.b32.xlu1 %v2182_v8, %s2247_s27 }
0x109e   :  { %v1087_v6 = vpop.permute.xlu0 %1086 }
0x109f   :  { %v1089_v9 = vmul.f32 %v2176_v50, %v1087_v6  ;;  %v1336_v50 = vrot.slane %v2550_v13, 6  ;;  %v2214_v6 = vld [vmem:[%s2675_s2 + $0x10] sm:$0xff]  }
0x10a1   :  { %v1163_v11 = vpack.c.bf16 %v1089_v9, %v1089_v9  ;;  %v2215_v9 = vld [vmem:[%s2674_s1 + $0x10] sm:$0xff]  }
0x10a3   :  { %v1159_v12 = vpop.permute.xlu1 %1158  ;;  %1165 = vrot.lane.b32.xlu0 %v1163_v11, %s2248_s28  ;;  %v2216_v11 = vld [vmem:[%s2675_s2 + $0x18] sm:$0xff]  }
0x10a4   :  { %v1161_v10 = vmul.f32 %v2178_v53, %v1159_v12  ;;  %v2217_v12 = vld [vmem:[%s2675_s2] sm:$0xff]  }
0x10a6   :  { %v1162_v14 = vpack.c.bf16 %v1161_v10, %v1161_v10  ;;  %v2218_v10 = vld [vmem:[%s2675_s2 + $0x8] sm:$0xff]  }
0x10a8   :  { %v1211_v16 = vrot.slane %v1162_v14, 1 }
0x10aa   :  { %1212 = vrot.lane.b32.xlu1 %v1211_v16, %s2248_s28 }
0x1115   :  { %v1166_v18 = vpop.permute.xlu0 %1165 }
0x1116   :  { %2034 = vmatmul.mubr.msk.bf16.vlgmr.msra.gmra.mrb[32].mxu1 %vm111_vm2, %v1166_v18 }
0x1117   :  { %2046 = vmatpush3.bf16.msra.mxu1 %v2288_v2  ;;  %2049 = vmatprep.mubr.msk.bf16.mxu1 %vm2245_vm0, %v2244_v1 }
0x1118   :  { %2047 = vmatprep.subr.bf16.mxu1 %v2244_v1 }
0x111b   :  { %2048 = vmatpush3.bf16.msra.mxu1 %v2299_v4 }
0x111c   :  { %v1213_v19 = vpop.permute.xlu1 %1212  ;;  %2061 = vmatprep.subr.bf16.mxu1 %v2244_v1 }
0x111d   :  { %2042 = vmatmul.mubr.msk.bf16.vlgmr.msra.gmra.mrb[36].mxu0 %vm111_vm2, %v1213_v19 }
0x111e   :  { %2050 = vmatmul.mubr.msk.bf16.vlgmr.msra.gmra.mrb[36].mxu1 %vm111_vm2, %v1213_v19  ;;  %2054 = vmatpush3.bf16.msra.mxu0 %v2333_v33 }
0x111f   :  { %2055 = vmatprep.subr.bf16.mxu0 %v2244_v1  ;;  %2062 = vmatpush3.bf16.msra.mxu1 %v2338_v34 }
0x1120   :  { %2057 = vmatprep.mubr.msk.bf16.mxu0 %vm2245_vm0, %v2244_v1  ;;  %2063 = vmatprep.subr.bf16.mxu1 %v2244_v1 }
0x1121   :  { %2065 = vmatprep.mubr.msk.bf16.mxu1 %vm2245_vm0, %v2244_v1 }
0x1122   :  { %2056 = vmatpush3.bf16.msra.mxu0 %v2344_v35 }
0x1123   :  { %2069 = vmatprep.subr.bf16.mxu0 %v2244_v1  ;;  %2064 = vmatpush3.bf16.msra.mxu1 %v2350_v36 }
0x1124   :  { %2077 = vmatprep.subr.bf16.mxu1 %v2244_v1 }
0x11e9   :  { %v1204_v2 = vpop.f32.mrb[32].mxu1 }
0x11ea   :  { %v2035_v4 = vpop.f32.mrb[33].mxu1 }
0x11eb   :  { %v1207_v33 = vpop.f32.mrb[34].mxu1 }
0x11ec   :  { %v2036_v34 = vpop.f32.mrb[35].mxu1 }
0x11f0   :  { %v1251_v20 = vpop.f32.mrb[36].mxu0 }
0x11f1   :  { %v1252_v21 = vadd.f32 %v1251_v20, %v1204_v2  ;;  %v2043_v23 = vpop.f32.mrb[37].mxu0  ;;  %v1317_v17 = vpop.f32.mrb[36].mxu1 }
0x11f2   :  { %v1254_v25 = vpop.f32.mrb[38].mxu0  ;;  %v1324_v22 = vrot.slane %v1317_v17, 4  ;;  %v2051_v26 = vpop.f32.mrb[37].mxu1 }
0x11f3   :  { %v1257_v27 = vadd.f32 %v1252_v21, %v2382_v47  ;;  %v2044_v35 = vpop.f32.mrb[39].mxu0  ;;  %v1320_v24 = vpop.f32.mrb[38].mxu1 }
0x11f4   :  { %v1326_v28 = vadd.f32 %v1324_v22, %v2322_v15  ;;  %v2052_v36 = vpop.f32.mrb[39].mxu1 }
0x11f5   :  { %v1799_v29 = vmul.f32 -1.442695, %v1257_v27 }
0x11f6   :  { %v1802_v30 = vmul.f32 -1.442695, %v1326_v28 }
0x11f7   :  { %2183 = vpow2.f32 %v1799_v29 }
0x11f8   :  { %2185 = vpow2.f32 %v1802_v30 }
0x1201   :  { %v2184_v31 = vpop.eup %2183 }
0x1202   :  { %v2186_v32 = vpop.eup %2185  ;;  %v1261_v37 = vadd.f32 1.0, %v2184_v31 }
0x1203   :  { %v1330_v38 = vadd.f32 1.0, %v2186_v32 }
0x1204   :  { %2187 = vrcp.f32 %v1261_v37 }
0x1205   :  { %2189 = vrcp.f32 %v1330_v38 }
0x120e   :  { %v2188_v39 = vpop.eup %2187 }
0x120f   :  { %v2190_v40 = vpop.eup %2189  ;;  %v1264_v41 = vmul.f32 2.0, %v2188_v39  ;;  %v1266_v51 = vmul.f32 %v2188_v39, %v2546_v62 }
0x1210   :  { %v1333_v42 = vmul.f32 2.0, %v2190_v40  ;;  %v1338_v53 = vmul.f32 %v2190_v40, %v1336_v50 }
0x1211   :  { %v1800_v43 = vadd.f32 -1.0, %v1264_v41 }
0x1212   :  { %v1803_v44 = vadd.f32 -1.0, %v1333_v42 }
0x1213   :  { %1268 = vrot.lane.b32.xlu0 %v1800_v43, %s2247_s27 }
0x1214   :  { %1340 = vrot.lane.b32.xlu1 %v1803_v44, %s2247_s27 }
0x1285   :  { %v1269_v45 = vpop.permute.xlu0 %1268 }
0x1286   :  { %v1271_v46 = vmul.f32 %v2188_v39, %v1269_v45  ;;  %v1341_v48 = vpop.permute.xlu1 %1340 }
0x1287   :  { %v1343_v49 = vmul.f32 %v2190_v40, %v1341_v48 }
0x1288   :  { %1273 = vrot.lane.b32.xlu0 %v1271_v46, %s2248_s28 }
0x1289   :  { %1345 = vrot.lane.b32.xlu1 %v1343_v49, %s2248_s28 }
0x12fa   :  { %v1274_v52 = vpop.permute.xlu0 %1273 }
0x12fb   :  { %v2586_v54 = vadd.f32 %v1274_v52, %v1266_v51  ;;  %v1346_v55 = vpop.permute.xlu1 %1345 }
0x12fc   :  { %v2588_v56 = vadd.f32 %v1346_v55, %v1338_v53 }
0x12fd   :  { %2191 = vtanh.f32 %v2586_v54 }
0x12fe   :  { %2193 = vtanh.f32 %v2588_v56  ;;  %v1529_v48 = vrot.slane %v2588_v56, 6 }
0x1307   :  { %v2192_v57 = vpop.eup %2191 }
0x1308   :  { %v2194_v58 = vpop.eup %2193  ;;  %1279 = vrot.lane.b32.xlu0 %v2192_v57, %s2247_s27 }
0x1309   :  { %1351 = vrot.lane.b32.xlu1 %v2194_v58, %s2247_s27 }
0x137a   :  { %v1280_v59 = vpop.permute.xlu0 %1279 }
0x137b   :  { %v1282_v60 = vmul.f32 %v2188_v39, %v1280_v59  ;;  %v1352_v61 = vpop.permute.xlu1 %1351 }
0x137c   :  { %v1354_v62 = vmul.f32 %v2190_v40, %v1352_v61 }
0x137d   :  { %v1356_v63 = vpack.c.bf16 %v1282_v60, %v1282_v60 }
0x137e   :  { %v1355_v0 = vpack.c.bf16 %v1354_v62, %v1354_v62 }
0x137f   :  { %1358 = vrot.lane.b32.xlu0 %v1356_v63, %s2248_s28 }
0x1380   :  { %v1404_v3 = vrot.slane %v1355_v0, 2 }
0x1382   :  { %1405 = vrot.lane.b32.xlu1 %v1404_v3, %s2248_s28 }
0x13f1   :  { %v1359_v13 = vpop.permute.xlu0 %1358 }
0x13f2   :  { %2058 = vmatmul.mubr.msk.bf16.vlgmr.msra.gmra.mrb[40].mxu0 %vm111_vm2, %v1359_v13 }
0x13f3   :  { %2070 = vmatpush3.bf16.msra.mxu0 %v2213_v5  ;;  %2073 = vmatprep.mubr.msk.bf16.mxu0 %vm2245_vm0, %v2244_v1 }
0x13f4   :  { %v1406_v8 = vpop.permute.xlu1 %1405  ;;  %2071 = vmatprep.subr.bf16.mxu0 %v2244_v1 }
0x13f5   :  { %2066 = vmatmul.mubr.msk.bf16.vlgmr.msra.gmra.mrb[40].mxu1 %vm111_vm2, %v1406_v8 }
0x13f6   :  { %2078 = vmatpush3.bf16.msra.mxu1 %v2214_v6  ;;  %2081 = vmatprep.mubr.msk.bf16.mxu1 %vm2245_vm0, %v2244_v1 }
0x13f7   :  { %2072 = vmatpush3.bf16.msra.mxu0 %v2215_v9  ;;  %2079 = vmatprep.subr.bf16.mxu1 %v2244_v1 }
0x13f8   :  { %2085 = vmatprep.subr.bf16.mxu0 %v2244_v1 }
0x13fa   :  { %2074 = vmatmul.mubr.msk.bf16.vlgmr.msra.gmra.mrb[44].mxu0 %vm111_vm2, %v1406_v8  ;;  %2080 = vmatpush3.bf16.msra.mxu1 %v2216_v11 }
0x13fb   :  { %2086 = vmatpush3.bf16.msra.mxu0 %v2217_v12  ;;  %2089 = vmatprep.mubr.msk.bf16.mxu0 %vm2245_vm0, %v2244_v1 }
0x13fc   :  { %2087 = vmatprep.subr.bf16.mxu0 %v2244_v1  ;;  %2093 = vmatprep.subr.bf16.mxu1 %v2244_v1 }
0x13ff   :  { %2088 = vmatpush3.bf16.msra.mxu0 %v2218_v10 }
0x14c5   :  { %v1397_v14 = vpop.f32.mrb[40].mxu0 }
0x14c6   :  { %v2059_v16 = vpop.f32.mrb[41].mxu0 }
0x14c7   :  { %v1400_v18 = vpop.f32.mrb[42].mxu0 }
0x14c8   :  { %v2060_v19 = vpop.f32.mrb[43].mxu0  ;;  %v1444_v2 = vpop.f32.mrb[40].mxu1 }
0x14c9   :  { %v1445_v4 = vadd.f32 %v1444_v2, %v1397_v14  ;;  %v2067_v33 = vpop.f32.mrb[41].mxu1 }
0x14ca   :  { %v1447_v34 = vpop.f32.mrb[42].mxu1 }
0x14cb   :  { %v1450_v20 = vadd.f32 %v1445_v4, %v2382_v47  ;;  %v2068_v21 = vpop.f32.mrb[43].mxu1 }
0x14cd   :  { %v1806_v23 = vmul.f32 -1.442695, %v1450_v20  ;;  %v1510_v17 = vpop.f32.mrb[44].mxu0 }
0x14ce   :  { %v1517_v25 = vrot.slane %v1510_v17, 2  ;;  %v2075_v22 = vpop.f32.mrb[45].mxu0 }
0x14cf   :  { %2195 = vpow2.f32 %v1806_v23  ;;  %v1513_v26 = vpop.f32.mrb[46].mxu0  ;;  %v2116_v23 = vld [vmem:[%s2677_s4 + $0x8] sm:$0xff]  }
0x14d0   :  { %v1519_v27 = vadd.f32 %v1517_v25, %v2322_v15  ;;  %v2076_v35 = vpop.f32.mrb[47].mxu0 }
0x14d1   :  { %v1676_v35 = vsub.s32 2, %v2311_v7 }
0x14d2   :  { %v1809_v24 = vmul.f32 -1.442695, %v1519_v27 }
0x14d4   :  { %2197 = vpow2.f32 %v1809_v24  ;;  %v2219_v24 = vld [vmem:[%s2676_s3] sm:$0x7] }
0x14d9   :  { %v2196_v28 = vpop.eup %2195 }
0x14da   :  { %v1454_v36 = vadd.f32 1.0, %v2196_v28  ;;  %v1677_v28 = vrot.slane %v2219_v24, %v1676_v35 }
0x14dc   :  { %2199 = vrcp.f32 %v1454_v36 }
0x14de   :  { %v2198_v29 = vpop.eup %2197 }
0x14df   :  { %v1523_v30 = vadd.f32 1.0, %v2198_v29 }
0x14e1   :  { %2201 = vrcp.f32 %v1523_v30 }
0x14e6   :  { %v2200_v31 = vpop.eup %2199 }
0x14e7   :  { %v1457_v32 = vmul.f32 2.0, %v2200_v31  ;;  %v1459_v44 = vmul.f32 %v2200_v31, %v2586_v54 }
0x14e9   :  { %v1807_v37 = vadd.f32 -1.0, %v1457_v32 }
0x14eb   :  { %v2202_v38 = vpop.eup %2201  ;;  %1461 = vrot.lane.b32.xlu1 %v1807_v37, %s2247_s27 }
0x14ec   :  { %v1526_v39 = vmul.f32 2.0, %v2202_v38  ;;  %v1531_v49 = vmul.f32 %v2202_v38, %v1529_v48 }
0x14ee   :  { %v1810_v40 = vadd.f32 -1.0, %v1526_v39 }
0x14f0   :  { %1533 = vrot.lane.b32.xlu0 %v1810_v40, %s2247_s27 }
0x155d   :  { %v1462_v15 = vpop.permute.xlu1 %1461 }
0x155e   :  { %v1464_v41 = vmul.f32 %v2200_v31, %v1462_v15 }
0x1560   :  { %1466 = vrot.lane.b32.xlu1 %v1464_v41, %s2248_s28 }
0x1562   :  { %v1534_v42 = vpop.permute.xlu0 %1533 }
0x1563   :  { %v1536_v43 = vmul.f32 %v2202_v38, %v1534_v42 }
0x1565   :  { %1538 = vrot.lane.b32.xlu0 %v1536_v43, %s2248_s28 }
0x15d2   :  { %v1467_v45 = vpop.permute.xlu1 %1466 }
0x15d3   :  { %v1469_v46 = vadd.f32 %v1467_v45, %v1459_v44 }
0x15d5   :  { %2203 = vtanh.f32 %v1469_v46 }
0x15d7   :  { %v1539_v50 = vpop.permute.xlu0 %1538 }
0x15d8   :  { %v1541_v51 = vadd.f32 %v1539_v50, %v1531_v49 }
0x15da   :  { %2205 = vtanh.f32 %v1541_v51 }
0x15df   :  { %v2204_v52 = vpop.eup %2203 }
0x15e0   :  { %1472 = vrot.lane.b32.xlu1 %v2204_v52, %s2247_s27 }
0x15e4   :  { %v2206_v53 = vpop.eup %2205 }
0x15e5   :  { %1544 = vrot.lane.b32.xlu0 %v2206_v53, %s2247_s27 }
0x1652   :  { %v1473_v55 = vpop.permute.xlu1 %1472 }
0x1653   :  { %v1475_v57 = vmul.f32 %v2200_v31, %v1473_v55 }
0x1655   :  { %v1549_v58 = vpack.c.bf16 %v1475_v57, %v1475_v57 }
0x1657   :  { %v1545_v59 = vpop.permute.xlu0 %1544  ;;  %1551 = vrot.lane.b32.xlu0 %v1549_v58, %s2248_s28 }
0x1658   :  { %v1547_v54 = vmul.f32 %v2202_v38, %v1545_v59 }
0x165a   :  { %v1548_v60 = vpack.c.bf16 %v1547_v54, %v1547_v54 }
0x165c   :  { %v1597_v56 = vrot.slane %v1548_v60, 3 }
0x165e   :  { %1598 = vrot.lane.b32.xlu1 %v1597_v56, %s2248_s28 }
0x16c9   :  { %v1552_v61 = vpop.permute.xlu0 %1551 }
0x16ca   :  { %2082 = vmatmul.mubr.msk.bf16.vlgmr.msra.gmra.mrb[44].mxu1 %vm111_vm2, %v1552_v61 }
0x16cb   :  { %2097 = vmatprep.mubr.msk.bf16.mxu1 %vm2245_vm0, %v2244_v1 }
0x16d0   :  { %v1599_v62 = vpop.permute.xlu1 %1598 }
0x16d1   :  { %2090 = vmatmul.mubr.msk.bf16.vlgmr.msra.gmra.mrb[48].mxu0 %vm111_vm2, %v1599_v62 }
0x179d   :  { %v1590_v63 = vpop.f32.mrb[44].mxu1 }
0x179e   :  { %v2083_v0 = vpop.f32.mrb[45].mxu1 }
0x179f   :  { %v1593_v3 = vpop.f32.mrb[46].mxu1 }
0x17a0   :  { %v2084_v13 = vpop.f32.mrb[47].mxu1 }
0x17a4   :  { %v1637_v5 = vpop.f32.mrb[48].mxu0 }
0x17a5   :  { %v1638_v8 = vadd.f32 %v1637_v5, %v1590_v63  ;;  %v2091_v6 = vpop.f32.mrb[49].mxu0 }
0x17a6   :  { %v1640_v9 = vpop.f32.mrb[50].mxu0 }
0x17a7   :  { %v1643_v11 = vadd.f32 %v1638_v8, %v2382_v47  ;;  %v2092_v12 = vpop.f32.mrb[51].mxu0  ;;  %v2115_v47 = vld [vmem:[%s2677_s4] sm:$0xff]   ;;  %s2249_s4 = smov [#allocation2]  }
0x17a8   :  { %2094 = vmatpush3.bf16.msra.mxu1 %v2115_v47  ;;  %s1744_s29 = sshll.u32 %s2249_s4, 4  ;;  %s1745_s29 = int_to_ptr.vmem [resolvable:$true] %s1744_s29 }
0x17a9   :  { %v1813_v10 = vmul.f32 -1.442695, %v1643_v11  ;;  %2095 = vmatprep.subr.bf16.mxu1 %v2244_v1  ;;  %p2225_p1 = scmp.lt.s32.totalorder %s1745_s29, %s1745_s29 }
0x17ab   :  { %2207 = vpow2.f32 %v1813_v10 }
0x17ac   :  { %2096 = vmatpush3.bf16.msra.mxu1 %v2116_v23 }
0x17b5   :  { %v2208_v14 = vpop.eup %2207 }
0x17b6   :  { %v1647_v16 = vadd.f32 1.0, %v2208_v14 }
0x17b8   :  { %2209 = vrcp.f32 %v1647_v16 }
0x17c2   :  { %v2210_v18 = vpop.eup %2209 }
0x17c3   :  { %v1650_v19 = vmul.f32 2.0, %v2210_v18  ;;  %v1652_v34 = vmul.f32 %v2210_v18, %v1469_v46 }
0x17c5   :  { %v1814_v2 = vadd.f32 -1.0, %v1650_v19 }
0x17c7   :  { %1654 = vrot.lane.b32.xlu0 %v1814_v2, %s2247_s27 }
0x1839   :  { %v1655_v4 = vpop.permute.xlu0 %1654 }
0x183a   :  { %v1657_v33 = vmul.f32 %v2210_v18, %v1655_v4 }
0x183c   :  { %1659 = vrot.lane.b32.xlu1 %v1657_v33, %s2248_s28 }
0x18ae   :  { %v1660_v20 = vpop.permute.xlu1 %1659 }
0x18af   :  { %v1662_v21 = vadd.f32 %v1660_v20, %v1652_v34 }
0x18b1   :  { %2211 = vtanh.f32 %v1662_v21 }
0x18bb   :  { %v2212_v17 = vpop.eup %2211 }
0x18bc   :  { %1665 = vrot.lane.b32.xlu0 %v2212_v17, %s2247_s27  ;;  %s2220_s27 = scalar_lea.vmem %s1745_s29, 32 }
0x18bd   :  { %p2221_p0 = scmp.ne.s32.totalorder %s1745_s29, %s2220_s27  ;;  %p2226_p2 = scmp.lt.s32.totalorder %s2220_s27, %s2220_s27 }
0x18bf   :  { %p2227_p3 = por %p2226_p2, %p2225_p1 }
0x18c1   :  { %p2228_p4 = pnand %p2227_p3, %p2221_p0 }
0x192e   :  { %v1666_v25 = vpop.permute.xlu0 %1665 }
0x192f   :  { %v1668_v22 = vmul.f32 %v2210_v18, %v1666_v25 }
0x1931   :  { %v1669_v26 = vpack.c.bf16 %v1668_v22, %v1668_v22 }
0x1933   :  { %1679 = vrot.lane.b32.xlu1 %v1669_v26, %s2248_s28 }
0x19a5   :  { %v1680_v27 = vpop.permute.xlu1 %1679 }
0x19a6   :  { %2098 = vmatmul.mubr.msk.bf16.vlgmr.msra.gmra.mrb[48].mxu1 %vm111_vm2, %v1680_v27 }
0x1a79   :  { %v1730_v1 = vpop.f32.mrb[48].mxu1 }
0x1a7a   :  { %v1731_v36 = vadd.f32 %v1730_v1, %v1677_v28  ;;  %v2099_v29 = vpop.f32.mrb[49].mxu1 }
0x1a7b   :  { %v1733_v30 = vpop.f32.mrb[50].mxu1 }
0x1a7c   :  { %v2100_v31 = vpop.f32.mrb[51].mxu1  ;;  %1737 = vst.msk [vmem:[#allocation2] sm:$0x3] %vm1736_vm3, %v1731_v36 }
0x1a7d   :  { %2231 = shalt.err (!%p2228_p4)
}
0x1a7e   :  { %s2232_s30 = scalar_lea.hbm %s2678_s5, 32 }
0x1a7f   :  { %p2233_p5 = scmp.ne.s32.totalorder %s2678_s5, %s2232_s30  ;;  %p2236_p6 = scmp.lt.u32.totalorder %s2232_s30, %s2678_s5 }
0x1a81   :  { %p2238_p7 = pnand %p2236_p6, %p2233_p5 }
0x1a83   :  { %2241 = shalt.err (!%p2238_p7)
}
0x1a84   :  { %1747 = dma.vmem_to_hbm [thread:$0]  %s1745_s29, 32, %s2678_s5, [#allocation3]  }
0x1a85   :  { %2242 = dma.done.wait [#allocation3], 32  }
0x1a86   :  { %2243 = vsyncadd [#allocation3], 4294967264 }
0x1a87   :  { %1751 = vsyncpa [#allocation3], 1 }

</bundles_post_ra>
